<compile_context>
chip_gen: v6e
topology: v6e:2x2x1
jax: 0.10.0
libtpu: 0.0.40
codegen_flags: <defaults>
</compile_context>

<pallas_src>
import numpy as np
import jax
import jax.numpy as jnp
from jax import lax
from jax.experimental import pallas as pl
from jax.experimental.pallas import tpu as pltpu

WIN_LENGTH = 400
HOP_LENGTH = WIN_LENGTH // 2        # 200
N_FFT = 400
N_MELS = 40
N_MFCC = 20
SAMPLE_RATE = 16000                 # torchaudio MFCC default
N_FREQS = N_FFT // 2 + 1            # 201 one-sided bins
N_FREQS_PAD = 256                   # freq axis padded to a lane multiple
N_MELS_PAD = 128                    # mel axis padded -> lane-dense kernel output
N_MFCC_PAD = 128                    # mfcc axis padded -> lane-dense kernel output
TOP_DB = 80.0
AMIN = 1e-10
MAX_TILE_F = 512                    # frames per grid step (plateau point, VMEM-safe)
VMEM_LIMIT = 32 * 1024 * 1024       # explicit scoped-VMEM budget (v5e default is 16 MiB)


# ----------------------------- constant matrices -----------------------------

def _hann_window(n):
    i = np.arange(n)
    return 0.5 - 0.5 * np.cos(2.0 * np.pi * i / n)      # periodic hann (torch default)


def _fused_dft_matrix():
    """(400, 512) f64: columns [0:256]=w*cos (201 real bins, rest 0),
    columns [256:512]=w*sin. Sign of the imaginary part is irrelevant (power)."""
    n = np.arange(N_FFT)[:, None]
    k = np.arange(N_FREQS)[None, :]
    ang = 2.0 * np.pi * n * k / N_FFT
    w = _hann_window(WIN_LENGTH)[:, None]
    m = np.zeros((N_FFT, 2 * N_FREQS_PAD), np.float64)
    m[:, :N_FREQS] = w * np.cos(ang)
    m[:, N_FREQS_PAD:N_FREQS_PAD + N_FREQS] = w * np.sin(ang)
    return m


def _mel_fbanks():
    """torchaudio.functional.melscale_fbanks (htk, norm=None), zero-padded to
    (N_FREQS_PAD, N_MELS_PAD)."""
    all_freqs = np.linspace(0.0, SAMPLE_RATE // 2, N_FREQS)
    hz_to_mel = lambda f: 2595.0 * np.log10(1.0 + f / 700.0)
    mel_to_hz = lambda m: 700.0 * (10.0 ** (m / 2595.0) - 1.0)
    m_pts = np.linspace(hz_to_mel(0.0), hz_to_mel(SAMPLE_RATE / 2.0), N_MELS + 2)
    f_pts = mel_to_hz(m_pts)
    f_diff = f_pts[1:] - f_pts[:-1]
    slopes = f_pts[None, :] - all_freqs[:, None]
    down = -slopes[:, :-2] / f_diff[:-1]
    up = slopes[:, 2:] / f_diff[1:]
    fb = np.maximum(0.0, np.minimum(down, up))          # (N_FREQS, N_MELS)
    fb_pad = np.zeros((N_FREQS_PAD, N_MELS_PAD), np.float64)
    fb_pad[:N_FREQS, :N_MELS] = fb
    return fb_pad.astype(np.float32)


def _dct_matrix():
    """torchaudio.functional.create_dct(N_MFCC, N_MELS, 'ortho'): rows = mfcc
    coeffs, cols = mel bins, zero-padded to (N_MFCC_PAD, N_MELS_PAD)."""
    n = np.arange(N_MELS)[None, :]
    k = np.arange(N_MFCC)[:, None]
    dct = np.cos(np.pi / N_MELS * (n + 0.5) * k)        # (N_MFCC, N_MELS)
    dct[0] *= 1.0 / np.sqrt(2.0)
    dct *= np.sqrt(2.0 / N_MELS)
    pad = np.zeros((N_MFCC_PAD, N_MELS_PAD), np.float64)
    pad[:N_MFCC, :N_MELS] = dct
    return pad.astype(np.float32)


def _round_up(v, m):
    return (v + m - 1) // m * m


# --------------------------------- kernels -----------------------------------

def _meldb_kernel(frames_ref, dft_ref, fb_ref, meldb_ref, tmax_ref):
    # Fused windowed DFT (real & imag packed into one (400, 512) bf16 matrix):
    # single MXU launch, f32 accumulation.
    spec = jnp.dot(frames_ref[...], dft_ref[...],
                   preferred_element_type=jnp.float32)          # (TILE_F, 512)
    re = spec[:, :N_FREQS_PAD]
    im = spec[:, N_FREQS_PAD:]
    power = re * re + im * im                                   # |STFT|^2 (f32)
    # bf16 MXU inputs for the mel projection (f32xf32 lowers to multi-pass MXU
    # work); log10 compression keeps the added error well inside tolerance.
    mel = jnp.dot(power.astype(jnp.bfloat16), fb_ref[...],
                  preferred_element_type=jnp.float32)           # (TILE_F, 128)
    # AmplitudeToDB("power"): db_multiplier = log10(ref=1.0) = 0.
    db = 10.0 * jnp.log10(jnp.maximum(mel, AMIN))
    meldb_ref[...] = db
    # Per-tile max for the global top_db clamp (avoids XLA re-reading the full
    # meldb array from HBM).  Padded mel lanes (>= N_MELS) are masked out;
    # padded (zero) frame rows evaluate to exactly 10*log10(AMIN), which can
    # never exceed the true max because every real value is clamped to >= AMIN.
    lane = lax.broadcasted_iota(jnp.int32, (1, N_MELS_PAD), 1)
    col_max = jnp.max(db, axis=0, keepdims=True)                # (1, 128)
    col_max = jnp.where(lane < N_MELS, col_max, -1e30)
    tmax_ref[...] = jnp.broadcast_to(col_max, (8, N_MELS_PAD))


def _mfcc_kernel(maxdb_ref, meldb_ref, dct_ref, out_ref):
    # Global top_db clamp (scalar floor from SMEM) + ortho DCT-II, written
    # transposed so the frame axis (multiple of 128) is the lane-dense output
    # minor dim -> unmasked stores, no big XLA transpose afterwards.
    floor = maxdb_ref[0, 0] - TOP_DB
    db = jnp.maximum(meldb_ref[...], floor)                     # (TILE_F, 128)
    # Padded mel columns (>= 40) multiply zero DCT columns -> no effect.
    out_ref[...] = lax.dot_general(
        dct_ref[...], db, (((1,), (1,)), ((), ())),
        preferred_element_type=jnp.float32)                     # (128, TILE_F)


# --------------------------------- wrapper -----------------------------------

def feature_extractor(x):
    """x: (batch, time) float32 waveform -> (batch, N_MFCC, n_frames)."""
    B, T = x.shape
    n_frames = 1 + (T - N_FFT) // HOP_LENGTH
    F = B * n_frames

    # Frame extraction without a gather: hop == win//2, so each frame is the
    # concatenation of two consecutive hop-sized half blocks.  bf16 frames
    # halve the HBM traffic into the kernel (MXU is bf16-native).
    # TODO(synk): this still materializes the 2x-overlapped frame matrix in
    # XLA; feeding the non-overlapped halves buffer straight into kernel 1
    # (two K=200 dots against a split DFT) would remove that pass but needs
    # element-offset block indexing / manual DMA — kept the robust concat.
    xb = x.astype(jnp.bfloat16)
    halves = xb[:, :(n_frames + 1) * HOP_LENGTH].reshape(B, n_frames + 1, HOP_LENGTH)
    frames = jnp.concatenate([halves[:, :-1, :], halves[:, 1:, :]], axis=-1)
    frames = frames.reshape(F, WIN_LENGTH)

    # Frame-axis tiling: tile_f is a multiple of 128 so the meldb rows and the
    # transposed MFCC output lanes stay aligned (unmasked stores); for
    # medium/long inputs the grid has >= 2 "parallel" steps so both v7x
    # TensorCores get work.  Padded zero frames give -100 dB rows that never
    # exceed the real global max and are sliced off at the end.
    if F > 256:
        tile_f = min(MAX_TILE_F, _round_up(-(-F // 2), 128))
    else:
        tile_f = 128
    f_pad = _round_up(F, tile_f)
    if f_pad != F:
        frames = jnp.pad(frames, ((0, f_pad - F), (0, 0)))
    num_tiles = f_pad // tile_f

    dft = jnp.asarray(_fused_dft_matrix(), dtype=jnp.bfloat16)   # (400, 512)
    fb = jnp.asarray(_mel_fbanks(), dtype=jnp.bfloat16)          # (256, 128)
    dct = jnp.asarray(_dct_matrix())                             # (128, 128) f32

    cparams = pltpu.CompilerParams(dimension_semantics=("parallel",),
                                   vmem_limit_bytes=VMEM_LIMIT)

    cost1 = pl.CostEstimate(
        flops=int(2 * f_pad * WIN_LENGTH * 2 * N_FREQS_PAD
                  + 2 * f_pad * N_FREQS_PAD * N_MELS_PAD
                  + 3 * f_pad * N_FREQS_PAD),
        transcendentals=int(f_pad * N_MELS_PAD),
        bytes_accessed=int(f_pad * WIN_LENGTH * 2
                           + WIN_LENGTH * 2 * N_FREQS_PAD * 2
                           + N_FREQS_PAD * N_MELS_PAD * 2
                           + f_pad * N_MELS_PAD * 4
                           + num_tiles * 8 * N_MELS_PAD * 4),
    )

    # Pass 1: per-frame mel-dB (tiled, pipelined, bf16 MXU) + per-tile maxima.
    meldb, tile_max = pl.pallas_call(
        _meldb_kernel,
        out_shape=(jax.ShapeDtypeStruct((f_pad, N_MELS_PAD), jnp.float32),
                   jax.ShapeDtypeStruct((num_tiles * 8, N_MELS_PAD), jnp.float32)),
        grid=(num_tiles,),
        in_specs=[
            pl.BlockSpec((tile_f, WIN_LENGTH), lambda i: (i, 0)),
            pl.BlockSpec((WIN_LENGTH, 2 * N_FREQS_PAD), lambda i: (0, 0)),
            pl.BlockSpec((N_FREQS_PAD, N_MELS_PAD), lambda i: (0, 0)),
        ],
        out_specs=(pl.BlockSpec((tile_f, N_MELS_PAD), lambda i: (i, 0)),
                   pl.BlockSpec((8, N_MELS_PAD), lambda i: (i, 0))),
        compiler_params=cparams,
        cost_estimate=cost1,
    )(frames, dft, fb)

    # torchaudio's AmplitudeToDB(top_db=80) clamps with one max over the whole
    # (batch, n_mels, time) mel specgram; reduce the tiny per-tile maxima
    # instead of re-reading meldb.
    max_db = jnp.max(tile_max).reshape(1, 1)

    cost2 = pl.CostEstimate(
        flops=int(2 * f_pad * N_MELS_PAD * N_MFCC_PAD + f_pad * N_MELS_PAD),
        transcendentals=0,
        bytes_accessed=int(f_pad * N_MELS_PAD * 4
                           + N_MELS_PAD * N_MFCC_PAD * 4
                           + f_pad * N_MFCC_PAD * 4 + 4),
    )

    # Pass 2: clamp + DCT, output transposed & lane-dense over frames.
    mfcc_t = pl.pallas_call(
        _mfcc_kernel,
        out_shape=jax.ShapeDtypeStruct((N_MFCC_PAD, f_pad), jnp.float32),
        grid=(num_tiles,),
        in_specs=[
            pl.BlockSpec(memory_space=pltpu.MemorySpace.SMEM),
            pl.BlockSpec((tile_f, N_MELS_PAD), lambda i: (i, 0)),
            pl.BlockSpec((N_MFCC_PAD, N_MELS_PAD), lambda i: (0, 0)),
        ],
        out_specs=pl.BlockSpec((N_MFCC_PAD, tile_f), lambda i: (0, i)),
        compiler_params=cparams,
        cost_estimate=cost2,
    )(max_db, meldb, dct)

    # Only 20 real rows to slice; the remaining permute is over small leading
    # axes (n_frames stays the minor, lane-dense axis of the slab).
    out = mfcc_t[:N_MFCC, :F].reshape(N_MFCC, B, n_frames)
    return out.transpose(1, 0, 2)                        # (B, N_MFCC, n_frames)


# ----------------------------------- main ------------------------------------

if __name__ == "__main__":
    key = jax.random.PRNGKey(0)
    B = 2
    T = WIN_LENGTH + HOP_LENGTH * 7          # -> 8 frames
    x = jax.random.normal(key, (B, T), dtype=jnp.float32)

    mfcc = jax.jit(feature_extractor)(x)
    mfcc = jax.block_until_ready(mfcc)
    n_frames = 1 + (T - N_FFT) // HOP_LENGTH
    assert mfcc.shape == (B, N_MFCC, n_frames), mfcc.shape

    # float64 numpy reference of the same MFCC pipeline (sanity check).
    xn = np.asarray(x, np.float64)
    idx = np.arange(n_frames)[:, None] * HOP_LENGTH + np.arange(WIN_LENGTH)[None, :]
    fr = xn[:, idx]                                         # (B, n_frames, 400)
    n = np.arange(N_FFT)[:, None]
    k = np.arange(N_FREQS)[None, :]
    ang = 2.0 * np.pi * n * k / N_FFT
    w = _hann_window(WIN_LENGTH)[:, None]
    re = fr @ (w * np.cos(ang))
    im = fr @ (w * np.sin(ang))
    power = re * re + im * im
    fb_ref = _mel_fbanks().astype(np.float64)[:N_FREQS, :N_MELS]
    mel = power @ fb_ref
    db = 10.0 * np.log10(np.maximum(mel, AMIN))
    db = np.maximum(db, db.max() - TOP_DB)
    dct_ref = _dct_matrix().astype(np.float64)[:N_MFCC, :N_MELS]
    ref = (db @ dct_ref.T).transpose(0, 2, 1)

    # bf16 DFT inputs + bf16 mel projection (both f32-accumulated) cost a few
    # tenths of a dB-domain unit worst case.
    np.testing.assert_allclose(np.asarray(mfcc, np.float64), ref,
                               rtol=1e-2, atol=3.5e-1)

    print("KERNEL_OK")
</pallas_src>

<mosaic_0001>
module attributes {stable_mosaic.version = 11 : i64} {
  func.func @_mfcc_kernel(%arg0: i32, %arg1: memref<1x1xf32, #tpu.memory_space<smem>>, %arg2: memref<128x128xf32, #tpu.memory_space<vmem>>, %arg3: memref<128x128xf32, #tpu.memory_space<vmem>>, %arg4: memref<128x128xf32, #tpu.memory_space<vmem>>) attributes {dimension_semantics = [#tpu.dimension_semantics<parallel>], iteration_bounds = array<i64: 1>, scalar_prefetch = 0 : i64, scratch_operands = 0 : i64, tpu.core_type = #tpu.core_type<tc>, window_params = [{transform_indices = @transform_0, window_bounds = array<i64: 1, 1>}, {transform_indices = @transform_1, window_bounds = array<i64: 128, 128>}, {pipeline_mode = #tpu.pipeline_mode<synchronous>, transform_indices = @transform_2, window_bounds = array<i64: 128, 128>}, {transform_indices = @transform_3, window_bounds = array<i64: 128, 128>}]} {
    %c0 = arith.constant 0 : index
    %c0_0 = arith.constant 0 : index
    %0 = memref.load %arg1[%c0, %c0_0] : memref<1x1xf32, #tpu.memory_space<smem>>
    %cst = arith.constant 8.000000e+01 : f32
    %1 = arith.subf %0, %cst : f32
    %c0_1 = arith.constant 0 : index
    %c0_2 = arith.constant 0 : index
    %2 = vector.load %arg2[%c0_1, %c0_2] : memref<128x128xf32, #tpu.memory_space<vmem>>, vector<128x128xf32>
    %3 = vector.broadcast %1 : f32 to vector<128x128xf32>
    %4 = arith.maximumf %2, %3 : vector<128x128xf32>
    %c0_3 = arith.constant 0 : index
    %c0_4 = arith.constant 0 : index
    %5 = vector.load %arg3[%c0_3, %c0_4] : memref<128x128xf32, #tpu.memory_space<vmem>>, vector<128x128xf32>
    %cst_5 = arith.constant dense<0.000000e+00> : vector<128x128xf32>
    %6 = tpu.matmul %5, %4, %cst_5 {dimension_numbers = #tpu.dot_dimension_numbers<[1], [1], [0], [0], [0, 0, 1, 0], [], []>} : vector<128x128xf32>, vector<128x128xf32>, vector<128x128xf32> -> vector<128x128xf32>
    %c0_6 = arith.constant 0 : index
    %c0_7 = arith.constant 0 : index
    %7 = vector.load %arg4[%c0_6, %c0_7] : memref<128x128xf32, #tpu.memory_space<vmem>>, vector<128x128xf32>
    tpu.vector_store %arg4[%c0_6, %c0_7], %6 {strides = array<i32>} : memref<128x128xf32, #tpu.memory_space<vmem>>, vector<128x128xf32>,
    return
  }
  func.func @transform_0(%arg0: i32) -> (i32, i32) {
    %c0_i32 = arith.constant 0 : i32
    %c0_i32_0 = arith.constant 0 : i32
    %c0_i32_1 = arith.constant 0 : i32
    return %c0_i32, %c0_i32_0 : i32, i32
  }
  func.func @transform_1(%arg0: i32) -> (i32, i32) {
    %c0_i32 = arith.constant 0 : i32
    %c0_i32_0 = arith.constant 0 : i32
    return %arg0, %c0_i32 : i32, i32
  }
  func.func @transform_2(%arg0: i32) -> (i32, i32) {
    %c0_i32 = arith.constant 0 : i32
    %c0_i32_0 = arith.constant 0 : i32
    %c0_i32_1 = arith.constant 0 : i32
    return %c0_i32, %c0_i32_0 : i32, i32
  }
  func.func @transform_3(%arg0: i32) -> (i32, i32) {
    %c0_i32 = arith.constant 0 : i32
    %c0_i32_0 = arith.constant 0 : i32
    return %c0_i32, %arg0 : i32, i32
  }
}

module attributes {stable_mosaic.version = 11 : i64} {
  func.func @_meldb_kernel(%arg0: i32, %arg1: memref<128x400xbf16, #tpu.memory_space<vmem>>, %arg2: memref<400x512xbf16, #tpu.memory_space<vmem>>, %arg3: memref<256x128xbf16, #tpu.memory_space<vmem>>, %arg4: memref<128x128xf32, #tpu.memory_space<vmem>>, %arg5: memref<8x128xf32, #tpu.memory_space<vmem>>) attributes {dimension_semantics = [#tpu.dimension_semantics<parallel>], iteration_bounds = array<i64: 1>, scalar_prefetch = 0 : i64, scratch_operands = 0 : i64, tpu.core_type = #tpu.core_type<tc>, window_params = [{transform_indices = @transform_0, window_bounds = array<i64: 128, 400>}, {pipeline_mode = #tpu.pipeline_mode<synchronous>, transform_indices = @transform_1, window_bounds = array<i64: 400, 512>}, {pipeline_mode = #tpu.pipeline_mode<synchronous>, transform_indices = @transform_2, window_bounds = array<i64: 256, 128>}, {transform_indices = @transform_3, window_bounds = array<i64: 128, 128>}, {transform_indices = @transform_4, window_bounds = array<i64: 8, 128>}]} {
    %c0 = arith.constant 0 : index
    %c0_0 = arith.constant 0 : index
    %0 = vector.load %arg1[%c0, %c0_0] : memref<128x400xbf16, #tpu.memory_space<vmem>>, vector<128x400xbf16>
    %c0_1 = arith.constant 0 : index
    %c0_2 = arith.constant 0 : index
    %1 = vector.load %arg2[%c0_1, %c0_2] : memref<400x512xbf16, #tpu.memory_space<vmem>>, vector<400x512xbf16>
    %cst = arith.constant dense<0.000000e+00> : vector<128x512xf32>
    %2 = tpu.matmul %0, %1, %cst {dimension_numbers = #tpu.dot_dimension_numbers<[1], [0], [0], [1], [0, 0, 1, 1], [], []>} : vector<128x400xbf16>, vector<400x512xbf16>, vector<128x512xf32> -> vector<128x512xf32>
    %3 = vector.extract_strided_slice %2 {offsets = [0, 0], sizes = [128, 256], strides = [1, 1]} : vector<128x512xf32> to vector<128x256xf32>
    %4 = vector.extract_strided_slice %2 {offsets = [0, 256], sizes = [128, 256], strides = [1, 1]} : vector<128x512xf32> to vector<128x256xf32>
    %5 = arith.mulf %3, %3 : vector<128x256xf32>
    %6 = arith.mulf %4, %4 : vector<128x256xf32>
    %7 = arith.addf %5, %6 : vector<128x256xf32>
    %8 = arith.truncf %7 : vector<128x256xf32> to vector<128x256xbf16>
    %c0_3 = arith.constant 0 : index
    %c0_4 = arith.constant 0 : index
    %9 = vector.load %arg3[%c0_3, %c0_4] : memref<256x128xbf16, #tpu.memory_space<vmem>>, vector<256x128xbf16>
    %cst_5 = arith.constant dense<0.000000e+00> : vector<128x128xf32>
    %10 = tpu.matmul %8, %9, %cst_5 {dimension_numbers = #tpu.dot_dimension_numbers<[1], [0], [0], [1], [0, 0, 1, 1], [], []>} : vector<128x256xbf16>, vector<256x128xbf16>, vector<128x128xf32> -> vector<128x128xf32>
    %cst_6 = arith.constant 1.000000e-10 : f32
    %11 = vector.broadcast %cst_6 : f32 to vector<128x128xf32>
    %12 = arith.maximumf %10, %11 : vector<128x128xf32>
    %13 = math.log %12 : vector<128x128xf32>
    %cst_7 = arith.constant 0.434294492 : f32
    %14 = vector.broadcast %cst_7 : f32 to vector<128x128xf32>
    %15 = arith.mulf %13, %14 : vector<128x128xf32>
    %cst_8 = arith.constant 1.000000e+01 : f32
    %16 = vector.broadcast %cst_8 : f32 to vector<128x128xf32>
    %17 = arith.mulf %16, %15 : vector<128x128xf32>
    %c0_9 = arith.constant 0 : index
    %c0_10 = arith.constant 0 : index
    %18 = vector.load %arg4[%c0_9, %c0_10] : memref<128x128xf32, #tpu.memory_space<vmem>>, vector<128x128xf32>
    tpu.vector_store %arg4[%c0_9, %c0_10], %17 {strides = array<i32>} : memref<128x128xf32, #tpu.memory_space<vmem>>, vector<128x128xf32>,
    %19 = tpu.iota {dimensions = array<i32: 1>} : vector<1x128xi32>
    %cst_11 = arith.constant dense<0xFF800000> : vector<128xf32>
    %20 = vector.multi_reduction <maximumf>, %17, %cst_11 [0] : vector<128x128xf32> to vector<128xf32>
    %21 = vector.shape_cast %20 : vector<128xf32> to vector<1x128xf32>
    %c40_i32 = arith.constant 40 : i32
    %22 = vector.broadcast %c40_i32 : i32 to vector<1x128xi32>
    %23 = arith.cmpi slt, %19, %22 : vector<1x128xi32>
    %cst_12 = arith.constant -1.000000e+30 : f32
    %24 = vector.broadcast %cst_12 : f32 to vector<1x128xf32>
    %25 = arith.select %23, %21, %24 : vector<1x128xi1>, vector<1x128xf32>
    %26 = vector.shape_cast %25 : vector<1x128xf32> to vector<1x128xf32>
    %27 = vector.broadcast %26 : vector<1x128xf32> to vector<8x128xf32>
    %c0_13 = arith.constant 0 : index
    %c0_14 = arith.constant 0 : index
    %28 = vector.load %arg5[%c0_13, %c0_14] : memref<8x128xf32, #tpu.memory_space<vmem>>, vector<8x128xf32>
    tpu.vector_store %arg5[%c0_13, %c0_14], %27 {strides = array<i32>} : memref<8x128xf32, #tpu.memory_space<vmem>>, vector<8x128xf32>,
    return
  }
  func.func @transform_0(%arg0: i32) -> (i32, i32) {
    %c0_i32 = arith.constant 0 : i32
    %c0_i32_0 = arith.constant 0 : i32
    return %arg0, %c0_i32 : i32, i32
  }
  func.func @transform_1(%arg0: i32) -> (i32, i32) {
    %c0_i32 = arith.constant 0 : i32
    %c0_i32_0 = arith.constant 0 : i32
    %c0_i32_1 = arith.constant 0 : i32
    return %c0_i32, %c0_i32_0 : i32, i32
  }
  func.func @transform_2(%arg0: i32) -> (i32, i32) {
    %c0_i32 = arith.constant 0 : i32
    %c0_i32_0 = arith.constant 0 : i32
    %c0_i32_1 = arith.constant 0 : i32
    return %c0_i32, %c0_i32_0 : i32, i32
  }
  func.func @transform_3(%arg0: i32) -> (i32, i32) {
    %c0_i32 = arith.constant 0 : i32
    %c0_i32_0 = arith.constant 0 : i32
    return %arg0, %c0_i32 : i32, i32
  }
  func.func @transform_4(%arg0: i32) -> (i32, i32) {
    %c0_i32 = arith.constant 0 : i32
    %c0_i32_0 = arith.constant 0 : i32
    return %arg0, %c0_i32 : i32, i32
  }
}

</mosaic_0001>

<bundles_post_ra>
// kernel: feature_extractor.3
= control target key start
LH: loop header
LB: loop body
LE: loop exit
PB: predicated region body
PF: predicated region fallthrough
CT: control target
= control target key end

     0   :  { %s537_s0 = inlined_call_operand.<no memory space> [shape: f32[1,1], index: 0, kind: input, shape index: {}]   ;;  %s538_s1 = inlined_call_operand.vmem [shape: f32[128,128], index: 1, kind: input, shape index: {}]   ;;  %s539_s2 = inlined_call_operand.vmem [shape: f32[128,128], index: 2, kind: input, shape index: {}]   ;;  %s540_s3 = inlined_call_operand.vmem [shape: f32[128,128], index: 3, kind: output, shape index: {}]  }
   0x1   :  { %s231_s14 = sadd.f32 -80.0, %s537_s0  ;;  %v32_v0 = vld [vmem:[%s538_s1 + $0x78] sm:$0xff]  ;;  %v31_v1 = vld [vmem:[%s538_s1 + $0x70] sm:$0xff]  ;;  %v30_v5 = vld [vmem:[%s538_s1 + $0x68] sm:$0xff] }
   0x2   :  { %v50_v6 = vld [vmem:[%s539_s2] sm:$0xff]  ;;  %v28_v11 = vld [vmem:[%s538_s1 + $0x58] sm:$0xff]  ;;  %v27_v13 = vld [vmem:[%s538_s1 + $0x50] sm:$0xff] }
   0x3   :  { %v381_v2 = vstv %s231_s14  ;;  %v58_v7 = vld [vmem:[%s539_s2 + $0x40] sm:$0xff]  ;;  %296 = vmatprep.mubr.f32.mxu0 %v50_v6  ;;  %v26_v15 = vld [vmem:[%s538_s1 + $0x48] sm:$0xff]  ;;  %v24_v19 = vld [vmem:[%s538_s1 + $0x38] sm:$0xff] }
   0x4   :  { %v49_v3 = vmax.f32 %v32_v0, %v381_v2  ;;  %v48_v4 = vmax.f32 %v31_v1, %v381_v2  ;;  %v47_v8 = vmax.f32 %v30_v5, %v381_v2  ;;  %v29_v9 = vld [vmem:[%s538_s1 + $0x60] sm:$0xff]  ;;  %308 = vmatprep.mubr.f32.mxu1 %v58_v7  ;;  %v45_v12 = vmax.f32 %v28_v11, %v381_v2  ;;  %v23_v21 = vld [vmem:[%s538_s1 + $0x30] sm:$0xff]  ;;  %v22_v23 = vld [vmem:[%s538_s1 + $0x28] sm:$0xff] }
   0x5   :  { %v46_v10 = vmax.f32 %v29_v9, %v381_v2  ;;  %v44_v14 = vmax.f32 %v27_v13, %v381_v2  ;;  %v43_v16 = vmax.f32 %v26_v15, %v381_v2  ;;  %v25_v17 = vld [vmem:[%s538_s1 + $0x40] sm:$0xff]  ;;  %v41_v20 = vmax.f32 %v24_v19, %v381_v2  ;;  %v20_v27 = vld [vmem:[%s538_s1 + $0x18] sm:$0xff]  ;;  %v19_v29 = vld [vmem:[%s538_s1 + $0x10] sm:$0xff] }
   0x6   :  { %264 = vmatprep.subr.mxu0 %v49_v3  ;;  %320 = vmatprep.subr.mxu1 %v49_v3  ;;  %v42_v18 = vmax.f32 %v25_v17, %v381_v2  ;;  %v40_v22 = vmax.f32 %v23_v21, %v381_v2  ;;  %v39_v24 = vmax.f32 %v22_v23, %v381_v2  ;;  %v21_v25 = vld [vmem:[%s538_s1 + $0x20] sm:$0xff]  ;;  %v18_v31 = vld [vmem:[%s538_s1 + $0x8] sm:$0xff]  ;;  %v52_v37 = vld [vmem:[%s539_s2 + $0x10] sm:$0xff] }
   0x7   :  { %265 = vmatpush3.xpose.msra.mxu0 %v49_v3  ;;  %336 = vmatpush3.xpose.msra.mxu1 %v49_v3  ;;  %v38_v26 = vmax.f32 %v21_v25, %v381_v2  ;;  %v37_v28 = vmax.f32 %v20_v27, %v381_v2  ;;  %v36_v30 = vmax.f32 %v19_v29, %v381_v2  ;;  %v17_v33 = vld [vmem:[%s538_s1] sm:$0xff]  ;;  %v51_v35 = vld [vmem:[%s539_s2 + $0x8] sm:$0xff]  ;;  %v60_v38 = vld [vmem:[%s539_s2 + $0x50] sm:$0xff] }
   0x8   :  { %266 = vmatprep.subr.mxu0 %v48_v4  ;;  %321 = vmatprep.subr.mxu1 %v48_v4  ;;  %v35_v32 = vmax.f32 %v18_v31, %v381_v2  ;;  %v34_v34 = vmax.f32 %v17_v33, %v381_v2  ;;  %v59_v36 = vld [vmem:[%s539_s2 + $0x48] sm:$0xff]  ;;  %v53_v39 = vld [vmem:[%s539_s2 + $0x18] sm:$0xff]  ;;  %v54_v41 = vld [vmem:[%s539_s2 + $0x20] sm:$0xff] }
   0x9   :  { %v61_v40 = vld [vmem:[%s539_s2 + $0x58] sm:$0xff]  ;;  %v62_v42 = vld [vmem:[%s539_s2 + $0x60] sm:$0xff]  ;;  %v55_v43 = vld [vmem:[%s539_s2 + $0x28] sm:$0xff] }
   0xa   :  { %v63_v44 = vld [vmem:[%s539_s2 + $0x68] sm:$0xff]  ;;  %v56_v45 = vld [vmem:[%s539_s2 + $0x30] sm:$0xff]  ;;  %v57_v47 = vld [vmem:[%s539_s2 + $0x38] sm:$0xff] }
   0xb   :  { %267 = vmatpush3.xpose.msra.mxu0 %v48_v4  ;;  %337 = vmatpush3.xpose.msra.mxu1 %v48_v4  ;;  %v64_v46 = vld [vmem:[%s539_s2 + $0x70] sm:$0xff]  ;;  %v65_v48 = vld [vmem:[%s539_s2 + $0x78] sm:$0xff] }
   0xc   :  { %268 = vmatprep.subr.mxu0 %v47_v8  ;;  %322 = vmatprep.subr.mxu1 %v47_v8 }
   0xf   :  { %269 = vmatpush3.xpose.msra.mxu0 %v47_v8  ;;  %338 = vmatpush3.xpose.msra.mxu1 %v47_v8 }
  0x10   :  { %270 = vmatprep.subr.mxu0 %v46_v10  ;;  %323 = vmatprep.subr.mxu1 %v46_v10 }
  0x13   :  { %271 = vmatpush3.xpose.msra.mxu0 %v46_v10  ;;  %339 = vmatpush3.xpose.msra.mxu1 %v46_v10 }
  0x14   :  { %272 = vmatprep.subr.mxu0 %v45_v12  ;;  %324 = vmatprep.subr.mxu1 %v45_v12 }
  0x17   :  { %273 = vmatpush3.xpose.msra.mxu0 %v45_v12  ;;  %340 = vmatpush3.xpose.msra.mxu1 %v45_v12 }
  0x18   :  { %274 = vmatprep.subr.mxu0 %v44_v14  ;;  %325 = vmatprep.subr.mxu1 %v44_v14 }
  0x1b   :  { %275 = vmatpush3.xpose.msra.mxu0 %v44_v14  ;;  %341 = vmatpush3.xpose.msra.mxu1 %v44_v14 }
  0x1c   :  { %276 = vmatprep.subr.mxu0 %v43_v16  ;;  %326 = vmatprep.subr.mxu1 %v43_v16 }
  0x1f   :  { %277 = vmatpush3.xpose.msra.mxu0 %v43_v16  ;;  %342 = vmatpush3.xpose.msra.mxu1 %v43_v16 }
  0x20   :  { %278 = vmatprep.subr.mxu0 %v42_v18  ;;  %327 = vmatprep.subr.mxu1 %v42_v18 }
  0x23   :  { %279 = vmatpush3.xpose.msra.mxu0 %v42_v18  ;;  %343 = vmatpush3.xpose.msra.mxu1 %v42_v18 }
  0x24   :  { %280 = vmatprep.subr.mxu0 %v41_v20  ;;  %328 = vmatprep.subr.mxu1 %v41_v20 }
  0x27   :  { %281 = vmatpush3.xpose.msra.mxu0 %v41_v20  ;;  %344 = vmatpush3.xpose.msra.mxu1 %v41_v20 }
  0x28   :  { %282 = vmatprep.subr.mxu0 %v40_v22  ;;  %329 = vmatprep.subr.mxu1 %v40_v22 }
  0x2b   :  { %283 = vmatpush3.xpose.msra.mxu0 %v40_v22  ;;  %345 = vmatpush3.xpose.msra.mxu1 %v40_v22 }
  0x2c   :  { %284 = vmatprep.subr.mxu0 %v39_v24  ;;  %330 = vmatprep.subr.mxu1 %v39_v24 }
  0x2f   :  { %285 = vmatpush3.xpose.msra.mxu0 %v39_v24  ;;  %346 = vmatpush3.xpose.msra.mxu1 %v39_v24 }
  0x30   :  { %286 = vmatprep.subr.mxu0 %v38_v26  ;;  %331 = vmatprep.subr.mxu1 %v38_v26 }
  0x33   :  { %287 = vmatpush3.xpose.msra.mxu0 %v38_v26  ;;  %347 = vmatpush3.xpose.msra.mxu1 %v38_v26 }
  0x34   :  { %288 = vmatprep.subr.mxu0 %v37_v28  ;;  %332 = vmatprep.subr.mxu1 %v37_v28 }
  0x37   :  { %289 = vmatpush3.xpose.msra.mxu0 %v37_v28  ;;  %348 = vmatpush3.xpose.msra.mxu1 %v37_v28 }
  0x38   :  { %290 = vmatprep.subr.mxu0 %v36_v30  ;;  %333 = vmatprep.subr.mxu1 %v36_v30 }
  0x3b   :  { %291 = vmatpush3.xpose.msra.mxu0 %v36_v30  ;;  %349 = vmatpush3.xpose.msra.mxu1 %v36_v30 }
  0x3c   :  { %292 = vmatprep.subr.mxu0 %v35_v32  ;;  %334 = vmatprep.subr.mxu1 %v35_v32 }
  0x3f   :  { %293 = vmatpush3.xpose.msra.mxu0 %v35_v32  ;;  %350 = vmatpush3.xpose.msra.mxu1 %v35_v32 }
  0x40   :  { %294 = vmatprep.subr.mxu0 %v34_v34  ;;  %335 = vmatprep.subr.mxu1 %v34_v34 }
  0x43   :  { %295 = vmatpush3.xpose.msra.mxu0 %v34_v34  ;;  %351 = vmatpush3.xpose.msra.mxu1 %v34_v34 }
  0x46   :  { %297 = vmatmul.mubr.f32.vlgmr.msra.gmra.mxu0 %v51_v35  ;;  %309 = vmatmul.mubr.f32.vlgmr.msra.gmra.mxu1 %v59_v36 }
  0x47   :  { %299 = vmatprep.mubr.f32.mxu0 %v52_v37  ;;  %311 = vmatprep.mubr.f32.mxu1 %v60_v38 }
  0x4a   :  { %300 = vmatmul.mubr.f32.gmra.mxu0 %v53_v39  ;;  %312 = vmatmul.mubr.f32.gmra.mxu1 %v61_v40 }
  0x4b   :  { %302 = vmatprep.mubr.f32.mxu0 %v54_v41  ;;  %314 = vmatprep.mubr.f32.mxu1 %v62_v42 }
  0x4e   :  { %303 = vmatmul.mubr.f32.gmra.mxu0 %v55_v43  ;;  %315 = vmatmul.mubr.f32.gmra.mxu1 %v63_v44 }
  0x4f   :  { %305 = vmatprep.mubr.f32.mxu0 %v56_v45  ;;  %317 = vmatprep.mubr.f32.mxu1 %v64_v46 }
  0x52   :  { %306 = vmatmul.mubr.f32.gmra.mxu0 %v57_v47  ;;  %318 = vmatmul.mubr.f32.gmra.mxu1 %v65_v48 }
 0x106   :  { %v298_v49 = vpop.f32.mrf.mxu0  ;;  %v310_v50 = vpop.f32.mrf.mxu1 }
 0x107   :  { %212 = vst [vmem:[%s540_s3 + $0x8] sm:$0xff] %v298_v49  ;;  %220 = vst [vmem:[%s540_s3 + $0x48] sm:$0xff] %v310_v50 }
 0x108   :  { %v132_v51 = vpop.f32.mrf.mxu0  ;;  %v172_v52 = vpop.f32.mrf.mxu1 }
 0x109   :  { %211 = vst [vmem:[%s540_s3] sm:$0xff] %v132_v51  ;;  %219 = vst [vmem:[%s540_s3 + $0x40] sm:$0xff] %v172_v52 }
 0x10a   :  { %v301_v53 = vpop.f32.mrf.mxu0  ;;  %v313_v54 = vpop.f32.mrf.mxu1 }
 0x10b   :  { %214 = vst [vmem:[%s540_s3 + $0x18] sm:$0xff] %v301_v53  ;;  %222 = vst [vmem:[%s540_s3 + $0x58] sm:$0xff] %v313_v54 }
 0x10c   :  { %v142_v55 = vpop.f32.mrf.mxu0  ;;  %v182_v56 = vpop.f32.mrf.mxu1 }
 0x10d   :  { %213 = vst [vmem:[%s540_s3 + $0x10] sm:$0xff] %v142_v55  ;;  %221 = vst [vmem:[%s540_s3 + $0x50] sm:$0xff] %v182_v56 }
 0x10e   :  { %v304_v57 = vpop.f32.mrf.mxu0  ;;  %v316_v58 = vpop.f32.mrf.mxu1 }
 0x10f   :  { %216 = vst [vmem:[%s540_s3 + $0x28] sm:$0xff] %v304_v57  ;;  %224 = vst [vmem:[%s540_s3 + $0x68] sm:$0xff] %v316_v58 }
 0x110   :  { %v152_v59 = vpop.f32.mrf.mxu0  ;;  %v192_v60 = vpop.f32.mrf.mxu1 }
 0x111   :  { %215 = vst [vmem:[%s540_s3 + $0x20] sm:$0xff] %v152_v59  ;;  %223 = vst [vmem:[%s540_s3 + $0x60] sm:$0xff] %v192_v60 }
 0x112   :  { %v307_v61 = vpop.f32.mrf.mxu0  ;;  %v319_v62 = vpop.f32.mrf.mxu1 }
 0x113   :  { %218 = vst [vmem:[%s540_s3 + $0x38] sm:$0xff] %v307_v61  ;;  %226 = vst [vmem:[%s540_s3 + $0x78] sm:$0xff] %v319_v62 }
 0x114   :  { %v162_v63 = vpop.f32.mrf.mxu0  ;;  %v202_v0 = vpop.f32.mrf.mxu1 }
 0x115   :  { %217 = vst [vmem:[%s540_s3 + $0x30] sm:$0xff] %v162_v63  ;;  %225 = vst [vmem:[%s540_s3 + $0x70] sm:$0xff] %v202_v0 }

// kernel: feature_extractor.2
= control target key start
LH: loop header
LB: loop body
LE: loop exit
PB: predicated region body
PF: predicated region fallthrough
CT: control target
= control target key end

     0   :  { %10 = vsyncpa [#allocation3], 0  ;;  %s2275_s15 = smov [#allocation2]   ;;  %s2807_s0 = inlined_call_operand.vmem [shape: bf16[128,400], index: 0, kind: input, shape index: {}]   ;;  %s2808_s1 = inlined_call_operand.hbm [shape: bf16[400,512], index: 1, kind: input, shape index: {}]   ;;  %s2809_s2 = inlined_call_operand.vmem [shape: bf16[256,128], index: 2, kind: input, shape index: {}]   ;;  %s2810_s3 = inlined_call_operand.vmem [shape: f32[128,128], index: 3, kind: output, shape index: {0}]   ;;  %s2811_s4 = inlined_call_operand.vmem [shape: f32[8,128], index: 4, kind: output, shape index: {1}]  }
   0x1   :  { %s18_s16 = sshll.u32 %s2275_s15, 4  ;;  %s19_s16 = int_to_ptr.vmem [resolvable:$true] %s18_s16 }
   0x2   :  { %s2261_s17 = scalar_lea.vmem %s19_s16, 12800  ;;  %p2266_p1 = scmp.lt.s32.totalorder %s19_s16, %s19_s16 }
   0x3   :  { %p2262_p0 = scmp.ne.s32.totalorder %s19_s16, %s2261_s17  ;;  %p2267_p2 = scmp.lt.s32.totalorder %s2261_s17, %s2261_s17 }
   0x5   :  { %p2268_p3 = por %p2267_p2, %p2266_p1 }
   0x7   :  { %p2269_p4 = pnand %p2268_p3, %p2262_p0 }
   0x9   :  { %2272 = shalt.err (!%p2269_p4)
}
   0xa   :  { %s2276_s18 = smov 256   ;;  %s2277_s19 = smov 16  }
   0xb   :  { %24 = dma.hbm_to_vmem [thread:$0]  %s2808_s1, 12800, %s19_s16, [#allocation3], %s2276_s18, %s2276_s18, %s2277_s19  }
   0xc   :  { %2273 = dma.done.wait [#allocation3], 12800  }
   0xd   :  { %2274 = vsyncadd [#allocation3], 4294954496  ;;  %v2007_v0 = vld [vmem:[#allocation2 + $0xe4] ss:$16 sps:$4 sm:$0xff]   ;;  %v2009_v1 = vld [vmem:[#allocation2 + $0xe0] ss:$16 sps:$4 sm:$0xff]  }
   0xe   :  { %840 = vmatprep.subr.bf16.mxu0 %v2007_v0  ;;  %v2010_v2 = vld [vmem:[#allocation2 + $0xc4] ss:$16 sps:$4 sm:$0xff]   ;;  %v2012_v3 = vld [vmem:[#allocation2 + $0xc0] ss:$16 sps:$4 sm:$0xff]   ;;  %vm815_vm0 = vcmask 130048  }
   0xf   :  { %841 = vmatpush1.bf16.msra.mxu0 %v2009_v1  ;;  %v2013_v4 = vld [vmem:[#allocation2 + $0xa4] ss:$16 sps:$4 sm:$0xff]   ;;  %v2015_v5 = vld [vmem:[#allocation2 + $0xa0] ss:$16 sps:$4 sm:$0xff]   ;;  %v2309_v34 = vld [vmem:[%s2807_s0 + $0xc] ss:$16 sps:$4 sm:$0xff]  }
  0x10   :  { %842 = vmatprep.subr.bf16.mxu0 %v2010_v2  ;;  %v2016_v6 = vld [vmem:[#allocation2 + $0x84] ss:$16 sps:$4 sm:$0xff]   ;;  %v2018_v8 = vld [vmem:[#allocation2 + $0x80] ss:$16 sps:$4 sm:$0xff]   ;;  %1892 = vmatprep.mubr.msk.bf16.mxu1 %vm815_vm0, %v2309_v34  ;;  %v2084_v43 = vld [vmem:[#allocation2 + $0xec] ss:$16 sps:$4 sm:$0xff]  }
  0x11   :  { %v2025_v7 = vld [vmem:[#allocation2 + $0x2e4] ss:$16 sps:$4 sm:$0xff]   ;;  %v2029_v9 = vld [vmem:[#allocation2 + $0x2e0] ss:$16 sps:$4 sm:$0xff]   ;;  %v2322_v46 = vld [vmem:[%s2807_s0 + $0x8] ss:$16 sps:$4 sm:$0xff]  }
  0x12   :  { %953 = vmatprep.subr.bf16.mxu1 %v2025_v7  ;;  %v2031_v10 = vld [vmem:[#allocation2 + $0x2c4] ss:$16 sps:$4 sm:$0xff]   ;;  %v2035_v12 = vld [vmem:[#allocation2 + $0x2c0] ss:$16 sps:$4 sm:$0xff]   ;;  %v2082_v47 = vld [vmem:[#allocation2 + $0xe8] ss:$16 sps:$4 sm:$0xff]  }
  0x13   :  { %843 = vmatpush1.bf16.msra.mxu0 %v2012_v3  ;;  %v2019_v11 = vld [vmem:[#allocation2 + $0x64] ss:$16 sps:$4 sm:$0xff]   ;;  %954 = vmatpush1.bf16.msra.mxu1 %v2029_v9  ;;  %v2021_v14 = vld [vmem:[#allocation2 + $0x60] ss:$16 sps:$4 sm:$0xff]   ;;  %v2093_v48 = vld [vmem:[#allocation2 + $0xcc] ss:$16 sps:$4 sm:$0xff]  }
  0x14   :  { %844 = vmatprep.subr.bf16.mxu0 %v2013_v4  ;;  %955 = vmatprep.subr.bf16.mxu1 %v2031_v10  ;;  %v2037_v13 = vld [vmem:[#allocation2 + $0x2a4] ss:$16 sps:$4 sm:$0xff]   ;;  %v2041_v16 = vld [vmem:[#allocation2 + $0x2a0] ss:$16 sps:$4 sm:$0xff]   ;;  %v2327_v49 = vld [vmem:[%s2807_s0 + $0x2c] ss:$16 sps:$4 sm:$0xff]  }
  0x15   :  { %v2022_v15 = vld [vmem:[#allocation2 + $0x44] ss:$16 sps:$4 sm:$0xff]   ;;  %v2024_v18 = vld [vmem:[#allocation2 + $0x40] ss:$16 sps:$4 sm:$0xff]   ;;  %v2091_v52 = vld [vmem:[#allocation2 + $0xc8] ss:$16 sps:$4 sm:$0xff]  }
  0x16   :  { %v2043_v17 = vld [vmem:[#allocation2 + $0x284] ss:$16 sps:$4 sm:$0xff]   ;;  %v2047_v20 = vld [vmem:[#allocation2 + $0x280] ss:$16 sps:$4 sm:$0xff]   ;;  %v2102_v53 = vld [vmem:[#allocation2 + $0xac] ss:$16 sps:$4 sm:$0xff]  }
  0x17   :  { %845 = vmatpush1.bf16.msra.mxu0 %v2015_v5  ;;  %956 = vmatpush1.bf16.msra.mxu1 %v2035_v12  ;;  %v2027_v19 = vld [vmem:[#allocation2 + $0x24] ss:$16 sps:$4 sm:$0xff]   ;;  %v2030_v22 = vld [vmem:[#allocation2 + $0x20] ss:$16 sps:$4 sm:$0xff]   ;;  %v2335_v56 = vld [vmem:[%s2807_s0 + $0x28] ss:$16 sps:$4 sm:$0xff]  }
  0x18   :  { %846 = vmatprep.subr.bf16.mxu0 %v2016_v6  ;;  %957 = vmatprep.subr.bf16.mxu1 %v2037_v13  ;;  %v2049_v21 = vld [vmem:[#allocation2 + $0x264] ss:$16 sps:$4 sm:$0xff]   ;;  %v2053_v24 = vld [vmem:[#allocation2 + $0x260] ss:$16 sps:$4 sm:$0xff]   ;;  %v2100_v57 = vld [vmem:[#allocation2 + $0xa8] ss:$16 sps:$4 sm:$0xff]  }
  0x19   :  { %v2033_v23 = vld [vmem:[#allocation2 + $0x4] ss:$16 sps:$4 sm:$0xff]   ;;  %v2036_v26 = vld [vmem:[#allocation2] ss:$16 sps:$4 sm:$0xff]   ;;  %v2107_v58 = vld [vmem:[#allocation2 + $0x8c] ss:$16 sps:$4 sm:$0xff]  }
  0x1a   :  { %v2055_v25 = vld [vmem:[#allocation2 + $0x244] ss:$16 sps:$4 sm:$0xff]   ;;  %v2059_v28 = vld [vmem:[#allocation2 + $0x240] ss:$16 sps:$4 sm:$0xff]   ;;  %v2340_v59 = vld [vmem:[%s2807_s0 + $0x4c] ss:$16 sps:$4 sm:$0xff]  }
  0x1b   :  { %847 = vmatpush1.bf16.msra.mxu0 %v2018_v8  ;;  %958 = vmatpush1.bf16.msra.mxu1 %v2041_v16  ;;  %v2039_v27 = vld [vmem:[#allocation2 + $0x1e4] ss:$16 sps:$4 sm:$0xff]   ;;  %v2042_v30 = vld [vmem:[#allocation2 + $0x1e0] ss:$16 sps:$4 sm:$0xff]   ;;  %v2105_v62 = vld [vmem:[#allocation2 + $0x88] ss:$16 sps:$4 sm:$0xff]  }
  0x1c   :  { %848 = vmatprep.subr.bf16.mxu0 %v2019_v11  ;;  %959 = vmatprep.subr.bf16.mxu1 %v2043_v17  ;;  %v2061_v29 = vld [vmem:[#allocation2 + $0x224] ss:$16 sps:$4 sm:$0xff]   ;;  %v2065_v32 = vld [vmem:[#allocation2 + $0x220] ss:$16 sps:$4 sm:$0xff]   ;;  %v2117_v63 = vld [vmem:[#allocation2 + $0x6c] ss:$16 sps:$4 sm:$0xff]  }
  0x1d   :  { %v2045_v31 = vld [vmem:[#allocation2 + $0x1c4] ss:$16 sps:$4 sm:$0xff]   ;;  %v2048_v35 = vld [vmem:[#allocation2 + $0x1c0] ss:$16 sps:$4 sm:$0xff]   ;;  %v2096_v1 = vld [vmem:[#allocation2 + $0x2ec] ss:$16 sps:$4 sm:$0xff]  }
  0x1e   :  { %v2067_v33 = vld [vmem:[#allocation2 + $0x204] ss:$16 sps:$4 sm:$0xff]   ;;  %v2071_v37 = vld [vmem:[#allocation2 + $0x200] ss:$16 sps:$4 sm:$0xff]   ;;  %v2348_v2 = vld [vmem:[%s2807_s0 + $0x48] ss:$16 sps:$4 sm:$0xff]  }
  0x1f   :  { %849 = vmatpush1.bf16.msra.mxu0 %v2021_v14  ;;  %960 = vmatpush1.bf16.msra.mxu1 %v2047_v20  ;;  %v2051_v36 = vld [vmem:[#allocation2 + $0x1a4] ss:$16 sps:$4 sm:$0xff]   ;;  %v2054_v40 = vld [vmem:[#allocation2 + $0x1a0] ss:$16 sps:$4 sm:$0xff]   ;;  %v2115_v3 = vld [vmem:[#allocation2 + $0x68] ss:$16 sps:$4 sm:$0xff]  }
  0x20   :  { %850 = vmatprep.subr.bf16.mxu0 %v2022_v15  ;;  %961 = vmatprep.subr.bf16.mxu1 %v2049_v21  ;;  %v2073_v38 = vld [vmem:[#allocation2 + $0x304] ss:$16 sps:$4 sm:$0xff]   ;;  %v2077_v42 = vld [vmem:[#allocation2 + $0x300] ss:$16 sps:$4 sm:$0xff]   ;;  %v2122_v4 = vld [vmem:[#allocation2 + $0x4c] ss:$16 sps:$4 sm:$0xff]  }
  0x21   :  { %v2316_v39 = vld [vmem:[%s2807_s0 + $0x4] ss:$16 sps:$4 sm:$0xff]   ;;  %v2060_v44 = vld [vmem:[#allocation2 + $0x180] ss:$16 sps:$4 sm:$0xff]   ;;  %v2353_v5 = vld [vmem:[%s2807_s0 + $0x6c] ss:$16 sps:$4 sm:$0xff]  }
  0x22   :  { %v2057_v41 = vld [vmem:[#allocation2 + $0x184] ss:$16 sps:$4 sm:$0xff]   ;;  %872 = vmatprep.mubr.bf16.mxu0 %v2316_v39  ;;  %v2066_v50 = vld [vmem:[#allocation2 + $0x160] ss:$16 sps:$4 sm:$0xff]   ;;  %v2094_v7 = vld [vmem:[#allocation2 + $0x2e8] ss:$16 sps:$4 sm:$0xff]  }
  0x23   :  { %851 = vmatpush1.bf16.msra.mxu0 %v2024_v18  ;;  %962 = vmatpush1.bf16.msra.mxu1 %v2053_v24  ;;  %v2063_v45 = vld [vmem:[#allocation2 + $0x164] ss:$16 sps:$4 sm:$0xff]   ;;  %v2072_v54 = vld [vmem:[#allocation2 + $0x140] ss:$16 sps:$4 sm:$0xff]   ;;  %v2111_v9 = vld [vmem:[#allocation2 + $0x2cc] ss:$16 sps:$4 sm:$0xff]  }
  0x24   :  { %852 = vmatprep.subr.bf16.mxu0 %v2027_v19  ;;  %963 = vmatprep.subr.bf16.mxu1 %v2055_v25  ;;  %v2069_v51 = vld [vmem:[#allocation2 + $0x144] ss:$16 sps:$4 sm:$0xff]   ;;  %v2078_v60 = vld [vmem:[#allocation2 + $0x120] ss:$16 sps:$4 sm:$0xff]   ;;  %v2120_v10 = vld [vmem:[#allocation2 + $0x48] ss:$16 sps:$4 sm:$0xff]  }
  0x25   :  { %v2075_v55 = vld [vmem:[#allocation2 + $0x124] ss:$16 sps:$4 sm:$0xff]   ;;  %v2087_v0 = vld [vmem:[#allocation2 + $0x100] ss:$16 sps:$4 sm:$0xff]   ;;  %v2132_v11 = vld [vmem:[#allocation2 + $0x2c] ss:$16 sps:$4 sm:$0xff]  }
  0x26   :  { %v2085_v61 = vld [vmem:[#allocation2 + $0x104] ss:$16 sps:$4 sm:$0xff]   ;;  %v2358_v6 = vld [vmem:[%s2807_s0] ss:$16 sps:$4 sm:$0xff]   ;;  %v2109_v12 = vld [vmem:[#allocation2 + $0x2c8] ss:$16 sps:$4 sm:$0xff]  }
  0x27   :  { %853 = vmatpush1.bf16.msra.mxu0 %v2030_v22  ;;  %964 = vmatpush1.bf16.msra.mxu1 %v2059_v28  ;;  %v2363_v8 = vld [vmem:[%s2807_s0 + $0x24] ss:$16 sps:$4 sm:$0xff]   ;;  %v2125_v13 = vld [vmem:[#allocation2 + $0x2ac] ss:$16 sps:$4 sm:$0xff]   ;;  %v2373_v14 = vld [vmem:[%s2807_s0 + $0x68] ss:$16 sps:$4 sm:$0xff]  }
  0x28   :  { %854 = vmatprep.subr.bf16.mxu0 %v2033_v23  ;;  %965 = vmatprep.subr.bf16.mxu1 %v2061_v29  ;;  %v2130_v15 = vld [vmem:[#allocation2 + $0x28] ss:$16 sps:$4 sm:$0xff]   ;;  %v2140_v16 = vld [vmem:[#allocation2 + $0xc] ss:$16 sps:$4 sm:$0xff]   ;;  %v2383_v18 = vld [vmem:[%s2807_s0 + $0x20] ss:$16 sps:$4 sm:$0xff]  }
  0x29   :  { %v2378_v17 = vld [vmem:[%s2807_s0 + $0x8c] ss:$16 sps:$4 sm:$0xff]   ;;  %v2388_v19 = vld [vmem:[%s2807_s0 + $0x44] ss:$16 sps:$4 sm:$0xff]   ;;  %v2123_v20 = vld [vmem:[#allocation2 + $0x2a8] ss:$16 sps:$4 sm:$0xff]  }
  0x2a   :  { %v2135_v21 = vld [vmem:[#allocation2 + $0x28c] ss:$16 sps:$4 sm:$0xff]   ;;  %v2138_v22 = vld [vmem:[#allocation2 + $0x8] ss:$16 sps:$4 sm:$0xff]  }
  0x2b   :  { %855 = vmatpush1.bf16.msra.mxu0 %v2036_v26  ;;  %966 = vmatpush1.bf16.msra.mxu1 %v2065_v32  ;;  %v2147_v23 = vld [vmem:[#allocation2 + $0x1ec] ss:$16 sps:$4 sm:$0xff]   ;;  %v2133_v24 = vld [vmem:[#allocation2 + $0x288] ss:$16 sps:$4 sm:$0xff]  }
  0x2c   :  { %856 = vmatprep.subr.bf16.mxu0 %v2039_v27  ;;  %967 = vmatprep.subr.bf16.mxu1 %v2067_v33  ;;  %v2397_v25 = vld [vmem:[%s2807_s0 + $0x88] ss:$16 sps:$4 sm:$0xff]   ;;  %v2150_v27 = vld [vmem:[#allocation2 + $0x26c] ss:$16 sps:$4 sm:$0xff]  }
  0x2d   :  { %v2145_v26 = vld [vmem:[#allocation2 + $0x1e8] ss:$16 sps:$4 sm:$0xff]   ;;  %v2155_v28 = vld [vmem:[#allocation2 + $0x1cc] ss:$16 sps:$4 sm:$0xff]  }
  0x2e   :  { %v2403_v29 = vld [vmem:[%s2807_s0 + $0xac] ss:$16 sps:$4 sm:$0xff]   ;;  %v2148_v32 = vld [vmem:[#allocation2 + $0x268] ss:$16 sps:$4 sm:$0xff]  }
  0x2f   :  { %857 = vmatpush2.bf16.msra.mxu0 %v2042_v30  ;;  %968 = vmatpush1.bf16.msra.mxu1 %v2071_v37  ;;  %v2408_v30 = vld [vmem:[%s2807_s0 + $0x40] ss:$16 sps:$4 sm:$0xff]   ;;  %v2153_v33 = vld [vmem:[#allocation2 + $0x1c8] ss:$16 sps:$4 sm:$0xff]  }
  0x30   :  { %858 = vmatprep.subr.bf16.mxu0 %v2045_v31  ;;  %983 = vmatprep.subr.bf16.mxu1 %v2073_v38  ;;  %v2413_v31 = vld [vmem:[%s2807_s0 + $0x64] ss:$16 sps:$4 sm:$0xff]   ;;  %v2422_v37 = vld [vmem:[%s2807_s0 + $0xa8] ss:$16 sps:$4 sm:$0xff]  }
  0x31   :  { %v2160_v38 = vld [vmem:[#allocation2 + $0x1a8] ss:$16 sps:$4 sm:$0xff]  }
  0x33   :  { %859 = vmatpush2.bf16.msra.mxu0 %v2048_v35  ;;  %984 = vmatpush2.bf16.msra.mxu1 %v2077_v42  ;;  %v2165_v35 = vld [vmem:[#allocation2 + $0x24c] ss:$16 sps:$4 sm:$0xff]   ;;  %v2428_v42 = vld [vmem:[%s2807_s0 + $0x60] ss:$16 sps:$4 sm:$0xff]  }
  0x34   :  { %860 = vmatprep.subr.bf16.mxu0 %v2051_v36  ;;  %1066 = vmatprep.subr.bf16.mxu1 %v2084_v43  ;;  %v2162_v36 = vld [vmem:[#allocation2 + $0x1ac] ss:$16 sps:$4 sm:$0xff]  }
  0x35   :  { %v2433_v43 = vld [vmem:[%s2807_s0 + $0xcc] ss:$16 sps:$4 sm:$0xff]  }
  0x36   :  { %986 = vmatmul.mubr.bf16.vlgmr.msra.gmra.mxu1 %v2322_v46 }
  0x37   :  { %861 = vmatpush2.bf16.msra.mxu0 %v2054_v40  ;;  %1067 = vmatpush1.bf16.msra.mxu1 %v2082_v47  ;;  %v2163_v40 = vld [vmem:[#allocation2 + $0x248] ss:$16 sps:$4 sm:$0xff]  }
  0x38   :  { %862 = vmatprep.subr.bf16.mxu0 %v2057_v41  ;;  %1068 = vmatprep.subr.bf16.mxu1 %v2093_v48  ;;  %v2170_v41 = vld [vmem:[#allocation2 + $0x18c] ss:$16 sps:$4 sm:$0xff]   ;;  %v2168_v47 = vld [vmem:[#allocation2 + $0x188] ss:$16 sps:$4 sm:$0xff]  }
  0x39   :  { %1893 = vmatprep.mubr.msk.bf16.mxu1 %vm815_vm0, %v2327_v49  ;;  %v2177_v48 = vld [vmem:[#allocation2 + $0x16c] ss:$16 sps:$4 sm:$0xff]  }
  0x3b   :  { %863 = vmatpush2.bf16.msra.mxu0 %v2060_v44  ;;  %1069 = vmatpush1.bf16.msra.mxu1 %v2091_v52  ;;  %v2180_v44 = vld [vmem:[#allocation2 + $0x22c] ss:$16 sps:$4 sm:$0xff]   ;;  %v2446_v52 = vld [vmem:[%s2807_s0 + $0xc8] ss:$16 sps:$4 sm:$0xff]  }
  0x3c   :  { %864 = vmatprep.subr.bf16.mxu0 %v2063_v45  ;;  %1070 = vmatprep.subr.bf16.mxu1 %v2102_v53  ;;  %v2438_v45 = vld [vmem:[%s2807_s0 + $0x84] ss:$16 sps:$4 sm:$0xff]   ;;  %v2189_v53 = vld [vmem:[#allocation2 + $0x208] ss:$16 sps:$4 sm:$0xff]  }
  0x3e   :  { %996 = vmatmul.mubr.bf16.gmra.mxu1 %v2335_v56 }
  0x3f   :  { %865 = vmatpush2.bf16.msra.mxu0 %v2066_v50  ;;  %1071 = vmatpush1.bf16.msra.mxu1 %v2100_v57  ;;  %v2178_v50 = vld [vmem:[#allocation2 + $0x228] ss:$16 sps:$4 sm:$0xff]   ;;  %v2185_v57 = vld [vmem:[#allocation2 + $0x14c] ss:$16 sps:$4 sm:$0xff]  }
  0x40   :  { %866 = vmatprep.subr.bf16.mxu0 %v2069_v51  ;;  %1072 = vmatprep.subr.bf16.mxu1 %v2107_v58  ;;  %v2191_v51 = vld [vmem:[#allocation2 + $0x20c] ss:$16 sps:$4 sm:$0xff]  }
  0x41   :  { %1894 = vmatprep.mubr.msk.bf16.mxu1 %vm815_vm0, %v2340_v59  ;;  %v2204_v58 = vld [vmem:[#allocation2 + $0x30c] ss:$16 sps:$4 sm:$0xff]  }
  0x43   :  { %867 = vmatpush2.bf16.msra.mxu0 %v2072_v54  ;;  %1073 = vmatpush1.bf16.msra.mxu1 %v2105_v62  ;;  %v2175_v54 = vld [vmem:[#allocation2 + $0x168] ss:$16 sps:$4 sm:$0xff]  }
  0x44   :  { %868 = vmatprep.subr.bf16.mxu0 %v2075_v55  ;;  %1074 = vmatprep.subr.bf16.mxu1 %v2117_v63  ;;  %v2452_v55 = vld [vmem:[%s2807_s0 + $0xec] ss:$16 sps:$4 sm:$0xff]   ;;  %v2202_v62 = vld [vmem:[#allocation2 + $0x308] ss:$16 sps:$4 sm:$0xff]  }
  0x45   :  { %v2183_v63 = vld [vmem:[#allocation2 + $0x148] ss:$16 sps:$4 sm:$0xff]  }
  0x46   :  { %1006 = vmatmul.mubr.bf16.gmra.mxu1 %v2348_v2 }
  0x47   :  { %869 = vmatpush2.bf16.msra.mxu0 %v2078_v60  ;;  %1075 = vmatpush1.bf16.msra.mxu1 %v2115_v3  ;;  %v2156_v60 = vld [vmem:[%s2807_s0 + $0x80] ss:$16 sps:$4 sm:$0xff]   ;;  %v2193_v3 = vld [vmem:[#allocation2 + $0x128] ss:$16 sps:$4 sm:$0xff]  }
  0x48   :  { %870 = vmatprep.subr.bf16.mxu0 %v2085_v61  ;;  %1076 = vmatprep.subr.bf16.mxu1 %v2122_v4  ;;  %v2166_v61 = vld [vmem:[%s2807_s0 + $0xa4] ss:$16 sps:$4 sm:$0xff]   ;;  %v2200_v4 = vld [vmem:[#allocation2 + $0x10c] ss:$16 sps:$4 sm:$0xff]  }
  0x49   :  { %1895 = vmatprep.mubr.msk.bf16.mxu1 %vm815_vm0, %v2353_v5 }
  0x4b   :  { %871 = vmatpush2.bf16.msra.mxu0 %v2087_v0  ;;  %1077 = vmatpush1.bf16.msra.mxu1 %v2120_v10  ;;  %v2195_v0 = vld [vmem:[#allocation2 + $0x12c] ss:$16 sps:$4 sm:$0xff]   ;;  %v2198_v10 = vld [vmem:[#allocation2 + $0x108] ss:$16 sps:$4 sm:$0xff]  }
  0x4c   :  { %1179 = vmatprep.subr.bf16.mxu0 %v2096_v1  ;;  %1078 = vmatprep.subr.bf16.mxu1 %v2132_v11  ;;  %v2467_v1 = vld [vmem:[%s2807_s0 + $0xe8] ss:$16 sps:$4 sm:$0xff]   ;;  %v2186_v11 = vld [vmem:[%s2807_s0 + $0xc0] ss:$16 sps:$4 sm:$0xff]  }
  0x4e   :  { %873 = vmatmul.mubr.bf16.vlgmr.msra.gmra.mxu0 %v2358_v6  ;;  %1016 = vmatmul.mubr.bf16.gmra.mxu1 %v2373_v14 }
  0x4f   :  { %1180 = vmatpush1.bf16.msra.mxu0 %v2094_v7  ;;  %882 = vmatprep.mubr.bf16.mxu0 %v2363_v8  ;;  %v2171_v7 = vld [vmem:[%s2807_s0 + $0xa0] ss:$16 sps:$4 sm:$0xff]  }
  0x50   :  { %1181 = vmatprep.subr.bf16.mxu0 %v2111_v9  ;;  %1079 = vmatpush1.bf16.msra.mxu1 %v2130_v15  ;;  %v2181_v9 = vld [vmem:[%s2807_s0 + $0xc4] ss:$16 sps:$4 sm:$0xff]  }
  0x51   :  { %1080 = vmatprep.subr.bf16.mxu1 %v2140_v16  ;;  %1896 = vmatprep.mubr.msk.bf16.mxu1 %vm815_vm0, %v2378_v17  ;;  %v2216_v15 = vld [vmem:[%s2809_s2 + $0x10] sm:$0xff]   ;;  %v2217_v16 = vld [vmem:[%s2809_s2 + $0x48] sm:$0xff]  }
  0x53   :  { %1182 = vmatpush1.bf16.msra.mxu0 %v2109_v12  ;;  %v2196_v12 = vld [vmem:[%s2807_s0 + $0xe4] ss:$16 sps:$4 sm:$0xff]  }
  0x54   :  { %1183 = vmatprep.subr.bf16.mxu0 %v2125_v13  ;;  %1081 = vmatpush1.bf16.msra.mxu1 %v2138_v22  ;;  %v2214_v13 = vld [vmem:[%s2809_s2 + $0x18] sm:$0xff]  }
  0x55   :  { %1082 = vmatprep.subr.bf16.mxu1 %v2147_v23 }
  0x56   :  { %883 = vmatmul.mubr.bf16.gmra.mxu0 %v2383_v18  ;;  %1026 = vmatmul.mubr.bf16.gmra.mxu1 %v2397_v25 }
  0x57   :  { %892 = vmatprep.mubr.bf16.mxu0 %v2388_v19  ;;  %1184 = vmatpush1.bf16.msra.mxu0 %v2123_v20 }
  0x58   :  { %1185 = vmatprep.subr.bf16.mxu0 %v2135_v21  ;;  %1083 = vmatpush2.bf16.msra.mxu1 %v2145_v26 }
  0x59   :  { %1084 = vmatprep.subr.bf16.mxu1 %v2155_v28  ;;  %1897 = vmatprep.mubr.msk.bf16.mxu1 %vm815_vm0, %v2403_v29 }
  0x5b   :  { %1186 = vmatpush1.bf16.msra.mxu0 %v2133_v24 }
  0x5c   :  { %1187 = vmatprep.subr.bf16.mxu0 %v2150_v27  ;;  %1085 = vmatpush2.bf16.msra.mxu1 %v2153_v33 }
  0x5d   :  { %1086 = vmatprep.subr.bf16.mxu1 %v2162_v36 }
  0x5e   :  { %893 = vmatmul.mubr.bf16.gmra.mxu0 %v2408_v30  ;;  %1036 = vmatmul.mubr.bf16.gmra.mxu1 %v2422_v37 }
  0x5f   :  { %902 = vmatprep.mubr.bf16.mxu0 %v2413_v31  ;;  %1188 = vmatpush1.bf16.msra.mxu0 %v2148_v32 }
  0x60   :  { %1189 = vmatprep.subr.bf16.mxu0 %v2165_v35  ;;  %1087 = vmatpush2.bf16.msra.mxu1 %v2160_v38 }
  0x61   :  { %1898 = vmatprep.mubr.msk.bf16.mxu1 %vm815_vm0, %v2433_v43  ;;  %1088 = vmatprep.subr.bf16.mxu1 %v2170_v41 }
  0x63   :  { %1190 = vmatpush1.bf16.msra.mxu0 %v2163_v40 }
  0x64   :  { %1191 = vmatprep.subr.bf16.mxu0 %v2180_v44  ;;  %1089 = vmatpush2.bf16.msra.mxu1 %v2168_v47 }
  0x65   :  { %1090 = vmatprep.subr.bf16.mxu1 %v2177_v48 }
  0x66   :  { %903 = vmatmul.mubr.bf16.gmra.mxu0 %v2428_v42  ;;  %1046 = vmatmul.mubr.bf16.gmra.mxu1 %v2446_v52 }
  0x67   :  { %912 = vmatprep.mubr.bf16.mxu0 %v2438_v45  ;;  %1192 = vmatpush1.bf16.msra.mxu0 %v2178_v50 }
  0x68   :  { %1193 = vmatprep.subr.bf16.mxu0 %v2191_v51  ;;  %1091 = vmatpush2.bf16.msra.mxu1 %v2175_v54 }
  0x69   :  { %1899 = vmatprep.mubr.msk.bf16.mxu1 %vm815_vm0, %v2452_v55  ;;  %1092 = vmatprep.subr.bf16.mxu1 %v2185_v57 }
  0x6b   :  { %1194 = vmatpush1.bf16.msra.mxu0 %v2189_v53 }
  0x6c   :  { %1209 = vmatprep.subr.bf16.mxu0 %v2204_v58  ;;  %1093 = vmatpush2.bf16.msra.mxu1 %v2183_v63 }
  0x6d   :  { %1094 = vmatprep.subr.bf16.mxu1 %v2195_v0 }
  0x6e   :  { %913 = vmatmul.mubr.bf16.gmra.mxu0 %v2156_v60  ;;  %1056 = vmatmul.mubr.bf16.gmra.mxu1 %v2467_v1 }
  0x6f   :  { %922 = vmatprep.mubr.bf16.mxu0 %v2166_v61  ;;  %1210 = vmatpush2.bf16.msra.mxu0 %v2202_v62 }
  0x70   :  { %1095 = vmatpush2.bf16.msra.mxu1 %v2193_v3  ;;  %1098 = vmatprep.mubr.bf16.mxu1 %v2316_v39  ;;  %v2201_v39 = vld [vmem:[%s2807_s0 + $0xe0] ss:$16 sps:$4 sm:$0xff]  }
  0x71   :  { %1096 = vmatprep.subr.bf16.mxu1 %v2200_v4 }
  0x74   :  { %1097 = vmatpush2.bf16.msra.mxu1 %v2198_v10 }
  0x76   :  { %923 = vmatmul.mubr.bf16.gmra.mxu0 %v2171_v7 }
  0x77   :  { %932 = vmatprep.mubr.bf16.mxu0 %v2181_v9  ;;  %1099 = vmatmul.mubr.bf16.vlgmr.msra.gmra.mxu1 %v2358_v6  ;;  %v2212_v6 = vld [vmem:[%s2809_s2 + $0x20] sm:$0xff]  }
  0x78   :  { %1108 = vmatprep.mubr.bf16.mxu1 %v2363_v8  ;;  %v2213_v8 = vld [vmem:[%s2809_s2 + $0x58] sm:$0xff]  }
  0x7e   :  { %933 = vmatmul.mubr.bf16.gmra.mxu0 %v2186_v11 }
  0x7f   :  { %942 = vmatprep.mubr.bf16.mxu0 %v2196_v12  ;;  %1109 = vmatmul.mubr.bf16.gmra.mxu1 %v2383_v18  ;;  %v2219_v18 = vld [vmem:[%s2809_s2 + $0x40] sm:$0xff]  }
  0x80   :  { %1118 = vmatprep.mubr.bf16.mxu1 %v2388_v19  ;;  %v2220_v19 = vld [vmem:[%s2809_s2] sm:$0xff]  }
  0x86   :  { %943 = vmatmul.mubr.bf16.gmra.mxu0 %v2201_v39 }
  0x87   :  { %1900 = vmatprep.mubr.msk.bf16.mxu0 %vm815_vm0, %v2309_v34  ;;  %1119 = vmatmul.mubr.bf16.gmra.mxu1 %v2408_v30  ;;  %v2205_v34 = vld [vmem:[%s2809_s2 + $0x78] sm:$0xff]  }
  0x88   :  { %1128 = vmatprep.mubr.bf16.mxu1 %v2413_v31  ;;  %1988 = vmatprep.subr.bf16.mxu1 %v2205_v34 }
  0x89   :  { %1924 = vmatprep.subr.bf16.mxu0 %v2205_v34 }
  0x8e   :  { %1212 = vmatmul.mubr.bf16.vlgmr.msra.gmra.mxu0 %v2322_v46  ;;  %v2206_v46 = vld [vmem:[%s2809_s2 + $0x38] sm:$0xff]  }
  0x8f   :  { %1901 = vmatprep.mubr.msk.bf16.mxu0 %vm815_vm0, %v2327_v49  ;;  %1129 = vmatmul.mubr.bf16.gmra.mxu1 %v2428_v42  ;;  %v2207_v49 = vld [vmem:[%s2809_s2 + $0x70] sm:$0xff]  }
  0x90   :  { %1138 = vmatprep.mubr.bf16.mxu1 %v2438_v45  ;;  %1996 = vmatpush3.bf16.msra.mxu1 %v2206_v46 }
  0x91   :  { %1925 = vmatpush3.bf16.msra.mxu0 %v2206_v46  ;;  %1989 = vmatprep.subr.bf16.mxu1 %v2207_v49 }
  0x92   :  { %1926 = vmatprep.subr.bf16.mxu0 %v2207_v49 }
  0x96   :  { %1222 = vmatmul.mubr.bf16.gmra.mxu0 %v2335_v56  ;;  %v2208_v56 = vld [vmem:[%s2809_s2 + $0x30] sm:$0xff]  }
  0x97   :  { %1902 = vmatprep.mubr.msk.bf16.mxu0 %vm815_vm0, %v2340_v59  ;;  %1139 = vmatmul.mubr.bf16.gmra.mxu1 %v2156_v60  ;;  %v2209_v59 = vld [vmem:[%s2809_s2 + $0x68] sm:$0xff]  }
  0x98   :  { %1148 = vmatprep.mubr.bf16.mxu1 %v2166_v61  ;;  %1997 = vmatpush3.bf16.msra.mxu1 %v2208_v56 }
  0x99   :  { %1927 = vmatpush3.bf16.msra.mxu0 %v2208_v56  ;;  %1990 = vmatprep.subr.bf16.mxu1 %v2209_v59 }
  0x9a   :  { %1928 = vmatprep.subr.bf16.mxu0 %v2209_v59 }
  0x9e   :  { %1232 = vmatmul.mubr.bf16.gmra.mxu0 %v2348_v2  ;;  %v2210_v2 = vld [vmem:[%s2809_s2 + $0x28] sm:$0xff]  }
  0x9f   :  { %1903 = vmatprep.mubr.msk.bf16.mxu0 %vm815_vm0, %v2353_v5  ;;  %1149 = vmatmul.mubr.bf16.gmra.mxu1 %v2171_v7  ;;  %v2211_v5 = vld [vmem:[%s2809_s2 + $0x60] sm:$0xff]  }
  0xa0   :  { %1158 = vmatprep.mubr.bf16.mxu1 %v2181_v9  ;;  %1998 = vmatpush3.bf16.msra.mxu1 %v2210_v2 }
  0xa1   :  { %1929 = vmatpush3.bf16.msra.mxu0 %v2210_v2  ;;  %1991 = vmatprep.subr.bf16.mxu1 %v2211_v5 }
  0xa2   :  { %1930 = vmatprep.subr.bf16.mxu0 %v2211_v5 }
  0xa4   :  { %1999 = vmatpush3.bf16.msra.mxu1 %v2212_v6 }
  0xa5   :  { %1931 = vmatpush3.bf16.msra.mxu0 %v2212_v6  ;;  %1992 = vmatprep.subr.bf16.mxu1 %v2213_v8 }
  0xa6   :  { %1242 = vmatmul.mubr.bf16.gmra.mxu0 %v2373_v14  ;;  %1932 = vmatprep.subr.bf16.mxu0 %v2213_v8  ;;  %v2215_v14 = vld [vmem:[%s2809_s2 + $0x50] sm:$0xff]  }
  0xa7   :  { %1904 = vmatprep.mubr.msk.bf16.mxu0 %vm815_vm0, %v2378_v17  ;;  %1159 = vmatmul.mubr.bf16.gmra.mxu1 %v2186_v11  ;;  %v2218_v17 = vld [vmem:[%s2809_s2 + $0x8] sm:$0xff]  }
  0xa8   :  { %1168 = vmatprep.mubr.bf16.mxu1 %v2196_v12  ;;  %2000 = vmatpush3.bf16.msra.mxu1 %v2214_v13 }
  0xa9   :  { %1933 = vmatpush3.bf16.msra.mxu0 %v2214_v13  ;;  %1993 = vmatprep.subr.bf16.mxu1 %v2215_v14 }
  0xaa   :  { %1934 = vmatprep.subr.bf16.mxu0 %v2215_v14 }
  0xac   :  { %2001 = vmatpush3.bf16.msra.mxu1 %v2216_v15 }
  0xad   :  { %1935 = vmatpush3.bf16.msra.mxu0 %v2216_v15  ;;  %1994 = vmatprep.subr.bf16.mxu1 %v2217_v16 }
  0xae   :  { %1252 = vmatmul.mubr.bf16.gmra.mxu0 %v2397_v25  ;;  %1936 = vmatprep.subr.bf16.mxu0 %v2217_v16 }
  0xaf   :  { %1905 = vmatprep.mubr.msk.bf16.mxu0 %vm815_vm0, %v2403_v29  ;;  %1169 = vmatmul.mubr.bf16.gmra.mxu1 %v2201_v39 }
  0xb0   :  { %2002 = vmatpush3.bf16.msra.mxu1 %v2218_v17 }
  0xb1   :  { %1937 = vmatpush3.bf16.msra.mxu0 %v2218_v17  ;;  %1995 = vmatprep.subr.bf16.mxu1 %v2219_v18 }
  0xb2   :  { %1938 = vmatprep.subr.bf16.mxu0 %v2219_v18 }
  0xb4   :  { %2003 = vmatpush3.bf16.msra.mxu1 %v2220_v19 }
  0xb5   :  { %1939 = vmatpush3.bf16.msra.mxu0 %v2220_v19 }
  0xb6   :  { %1262 = vmatmul.mubr.bf16.gmra.mxu0 %v2422_v37 }
  0xb7   :  { %1906 = vmatprep.mubr.msk.bf16.mxu0 %vm815_vm0, %v2433_v43 }
  0xbe   :  { %1272 = vmatmul.mubr.bf16.gmra.mxu0 %v2446_v52 }
  0xbf   :  { %1907 = vmatprep.mubr.msk.bf16.mxu0 %vm815_vm0, %v2452_v55 }
  0xc6   :  { %1282 = vmatmul.mubr.bf16.gmra.mxu0 %v2467_v1 }
  0xf6   :  { %v987_v20 = vpop.f32.mrf.mxu1 }
  0xf8   :  { %v989_v21 = vpop.f32.mrf.mxu1 }
  0xfa   :  { %v991_v22 = vpop.f32.mrf.mxu1 }
  0xfc   :  { %v993_v23 = vpop.f32.mrf.mxu1 }
  0xfe   :  { %v997_v24 = vpop.f32.mrf.mxu1 }
 0x100   :  { %v999_v25 = vpop.f32.mrf.mxu1 }
 0x102   :  { %v1001_v26 = vpop.f32.mrf.mxu1 }
 0x104   :  { %v1003_v27 = vpop.f32.mrf.mxu1 }
 0x106   :  { %v1007_v28 = vpop.f32.mrf.mxu1 }
 0x108   :  { %v1009_v29 = vpop.f32.mrf.mxu1 }
 0x10a   :  { %v1011_v32 = vpop.f32.mrf.mxu1 }
 0x10c   :  { %v1013_v36 = vpop.f32.mrf.mxu1 }
 0x10e   :  { %v874_v30 = vpop.f32.mrf.mxu0  ;;  %v1017_v40 = vpop.f32.mrf.mxu1 }
 0x10f   :  { %v2566_v31 = vadd.f32 %v987_v20, %v874_v30 }
 0x110   :  { %v876_v33 = vpop.f32.mrf.mxu0  ;;  %v1019_v43 = vpop.f32.mrf.mxu1 }
 0x111   :  { %v2568_v35 = vadd.f32 %v989_v21, %v876_v33 }
 0x112   :  { %v878_v37 = vpop.f32.mrf.mxu0  ;;  %v1021_v47 = vpop.f32.mrf.mxu1 }
 0x113   :  { %v2570_v38 = vadd.f32 %v991_v22, %v878_v37 }
 0x114   :  { %v880_v41 = vpop.f32.mrf.mxu0  ;;  %v1023_v51 = vpop.f32.mrf.mxu1 }
 0x115   :  { %v2572_v42 = vadd.f32 %v993_v23, %v880_v41 }
 0x116   :  { %v884_v44 = vpop.f32.mrf.mxu0  ;;  %v1027_v54 = vpop.f32.mrf.mxu1 }
 0x117   :  { %v2574_v45 = vadd.f32 %v997_v24, %v884_v44 }
 0x118   :  { %v886_v48 = vpop.f32.mrf.mxu0  ;;  %v1029_v58 = vpop.f32.mrf.mxu1 }
 0x119   :  { %v2576_v50 = vadd.f32 %v999_v25, %v886_v48 }
 0x11a   :  { %v888_v52 = vpop.f32.mrf.mxu0  ;;  %v1031_v62 = vpop.f32.mrf.mxu1 }
 0x11b   :  { %v2578_v53 = vadd.f32 %v1001_v26, %v888_v52 }
 0x11c   :  { %v890_v55 = vpop.f32.mrf.mxu0  ;;  %v1033_v1 = vpop.f32.mrf.mxu1 }
 0x11d   :  { %v2580_v57 = vadd.f32 %v1003_v27, %v890_v55 }
 0x11e   :  { %v894_v60 = vpop.f32.mrf.mxu0  ;;  %v1037_v7 = vpop.f32.mrf.mxu1 }
 0x11f   :  { %v2582_v61 = vadd.f32 %v1007_v28, %v894_v60 }
 0x120   :  { %v896_v63 = vpop.f32.mrf.mxu0  ;;  %v1039_v11 = vpop.f32.mrf.mxu1 }
 0x121   :  { %v2584_v0 = vadd.f32 %v1009_v29, %v896_v63 }
 0x122   :  { %v898_v3 = vpop.f32.mrf.mxu0  ;;  %v1041_v34 = vpop.f32.mrf.mxu1 }
 0x123   :  { %v2586_v4 = vadd.f32 %v1011_v32, %v898_v3 }
 0x124   :  { %v900_v9 = vpop.f32.mrf.mxu0  ;;  %v1043_v56 = vpop.f32.mrf.mxu1 }
 0x125   :  { %v2588_v10 = vadd.f32 %v1013_v36, %v900_v9 }
 0x126   :  { %v904_v12 = vpop.f32.mrf.mxu0  ;;  %v1047_v5 = vpop.f32.mrf.mxu1 }
 0x127   :  { %v2590_v39 = vadd.f32 %v1017_v40, %v904_v12 }
 0x128   :  { %v906_v46 = vpop.f32.mrf.mxu0  ;;  %v1049_v13 = vpop.f32.mrf.mxu1 }
 0x129   :  { %v2592_v49 = vadd.f32 %v1019_v43, %v906_v46 }
 0x12a   :  { %v908_v59 = vpop.f32.mrf.mxu0  ;;  %v1051_v16 = vpop.f32.mrf.mxu1 }
 0x12b   :  { %v2594_v2 = vadd.f32 %v1021_v47, %v908_v59 }
 0x12c   :  { %v910_v6 = vpop.f32.mrf.mxu0  ;;  %v1053_v19 = vpop.f32.mrf.mxu1 }
 0x12d   :  { %v2596_v8 = vadd.f32 %v1023_v51, %v910_v6 }
 0x12e   :  { %v914_v14 = vpop.f32.mrf.mxu0  ;;  %v1057_v22 = vpop.f32.mrf.mxu1 }
 0x12f   :  { %v2598_v15 = vadd.f32 %v1027_v54, %v914_v14 }
 0x130   :  { %v916_v17 = vpop.f32.mrf.mxu0  ;;  %v1059_v25 = vpop.f32.mrf.mxu1 }
 0x131   :  { %v2600_v18 = vadd.f32 %v1029_v58, %v916_v17 }
 0x132   :  { %v918_v20 = vpop.f32.mrf.mxu0  ;;  %v1061_v28 = vpop.f32.mrf.mxu1 }
 0x133   :  { %v2602_v21 = vadd.f32 %v1031_v62, %v918_v20 }
 0x134   :  { %v920_v23 = vpop.f32.mrf.mxu0  ;;  %v1063_v32 = vpop.f32.mrf.mxu1 }
 0x135   :  { %v2604_v24 = vadd.f32 %v1033_v1, %v920_v23 }
 0x136   :  { %v924_v26 = vpop.f32.mrf.mxu0 }
 0x137   :  { %v2606_v27 = vadd.f32 %v1037_v7, %v924_v26  ;;  %v1100_v37 = vpop.f32.mrf.mxu1 }
 0x138   :  { %v926_v29 = vpop.f32.mrf.mxu0 }
 0x139   :  { %v2608_v30 = vadd.f32 %v1039_v11, %v926_v29  ;;  %v1102_v43 = vpop.f32.mrf.mxu1 }
 0x13a   :  { %v928_v33 = vpop.f32.mrf.mxu0 }
 0x13b   :  { %v2610_v36 = vadd.f32 %v1041_v34, %v928_v33  ;;  %v1104_v48 = vpop.f32.mrf.mxu1 }
 0x13c   :  { %v930_v40 = vpop.f32.mrf.mxu0 }
 0x13d   :  { %v2612_v41 = vadd.f32 %v1043_v56, %v930_v40  ;;  %v1106_v54 = vpop.f32.mrf.mxu1 }
 0x13e   :  { %v934_v44 = vpop.f32.mrf.mxu0 }
 0x13f   :  { %v2614_v47 = vadd.f32 %v1047_v5, %v934_v44  ;;  %v1110_v60 = vpop.f32.mrf.mxu1 }
 0x140   :  { %v936_v51 = vpop.f32.mrf.mxu0 }
 0x141   :  { %v2616_v52 = vadd.f32 %v1049_v13, %v936_v51  ;;  %v1112_v1 = vpop.f32.mrf.mxu1 }
 0x142   :  { %v938_v55 = vpop.f32.mrf.mxu0 }
 0x143   :  { %v2618_v58 = vadd.f32 %v1051_v16, %v938_v55  ;;  %v1114_v9 = vpop.f32.mrf.mxu1 }
 0x144   :  { %v940_v62 = vpop.f32.mrf.mxu0 }
 0x145   :  { %v2620_v63 = vadd.f32 %v1053_v19, %v940_v62  ;;  %v1116_v34 = vpop.f32.mrf.mxu1 }
 0x146   :  { %v944_v3 = vpop.f32.mrf.mxu0 }
 0x147   :  { %v2622_v7 = vadd.f32 %v1057_v22, %v944_v3  ;;  %v1120_v59 = vpop.f32.mrf.mxu1 }
 0x148   :  { %v946_v11 = vpop.f32.mrf.mxu0 }
 0x149   :  { %v2624_v12 = vadd.f32 %v1059_v25, %v946_v11  ;;  %v1122_v13 = vpop.f32.mrf.mxu1 }
 0x14a   :  { %v948_v46 = vpop.f32.mrf.mxu0 }
 0x14b   :  { %v2626_v56 = vadd.f32 %v1061_v28, %v948_v46  ;;  %v1124_v17 = vpop.f32.mrf.mxu1  ;;  %v1292_v28 = vmul.f32 %v2566_v31, %v2566_v31 }
 0x14c   :  { %v950_v5 = vpop.f32.mrf.mxu0 }
 0x14d   :  { %v2628_v6 = vadd.f32 %v1063_v32, %v950_v5  ;;  %v2630_v22 = vpop.f32.mrf.mxu1  ;;  %v1294_v32 = vmul.f32 %v2570_v38, %v2570_v38 }
 0x14e   :  { %v1213_v14 = vpop.f32.mrf.mxu0 }
 0x14f   :  { %v1214_v16 = vadd.f32 %v1213_v14, %v1100_v37  ;;  %v2632_v29 = vpop.f32.mrf.mxu1 }
 0x150   :  { %v1215_v19 = vpop.f32.mrf.mxu0 }
 0x151   :  { %v1216_v20 = vadd.f32 %v1215_v19, %v1102_v43  ;;  %v1324_v26 = vmul.f32 %v1214_v16, %v1214_v16  ;;  %v2638_v51 = vpop.f32.mrf.mxu1  ;;  %v1293_v43 = vmul.f32 %v2568_v35, %v2568_v35 }
 0x152   :  { %v1217_v23 = vpop.f32.mrf.mxu0 }
 0x153   :  { %v1218_v25 = vadd.f32 %v1217_v23, %v1104_v48  ;;  %v1325_v40 = vmul.f32 %v1216_v20, %v1216_v20  ;;  %v1295_v48 = vmul.f32 %v2572_v42, %v2572_v42  ;;  %v1356_v62 = vadd.f32 %v1324_v26, %v1292_v28  ;;  %v2644_v46 = vpop.f32.mrf.mxu1 }
 0x154   :  { %v1219_v33 = vpop.f32.mrf.mxu0  ;;  %v1296_v42 = vmul.f32 %v2574_v45, %v2574_v45 }
 0x155   :  { %v1326_v44 = vmul.f32 %v1218_v25, %v1218_v25  ;;  %v1220_v37 = vadd.f32 %v1219_v33, %v1106_v54  ;;  %v1357_v38 = vadd.f32 %v1325_v40, %v1293_v43  ;;  %v2646_v19 = vpop.f32.mrf.mxu1 }
 0x156   :  { %v1223_v55 = vpop.f32.mrf.mxu0 }
 0x157   :  { %v1358_v3 = vadd.f32 %v1326_v44, %v1294_v32  ;;  %v1327_v11 = vmul.f32 %v1220_v37, %v1220_v37  ;;  %v1224_v31 = vadd.f32 %v1223_v55, %v1110_v60  ;;  %v2648_v33 = vpop.f32.mrf.mxu1  ;;  %v1298_v60 = vmul.f32 %v2578_v53, %v2578_v53 }
 0x158   :  { %v1225_v5 = vpop.f32.mrf.mxu0  ;;  %v1297_v44 = vmul.f32 %v2576_v50, %v2576_v50 }
 0x159   :  { %v1388_v14 = vpack.c.bf16 %v1358_v3, %v1356_v62  ;;  %v1359_v16 = vadd.f32 %v1327_v11, %v1295_v48  ;;  %v1226_v54 = vadd.f32 %v1225_v5, %v1112_v1  ;;  %v1328_v23 = vmul.f32 %v1224_v31, %v1224_v31  ;;  %v2654_v1 = vpop.f32.mrf.mxu1 }
 0x15a   :  { %v1227_v20 = vpop.f32.mrf.mxu0 }
 0x15b   :  { %v1228_v35 = vadd.f32 %v1227_v20, %v1114_v9  ;;  %v1389_v25 = vpack.c.bf16 %v1359_v16, %v1357_v38  ;;  %v1329_v28 = vmul.f32 %v1226_v54, %v1226_v54  ;;  %v1299_v9 = vmul.f32 %v2580_v57, %v2580_v57  ;;  %v1144_v62 = vpop.f32.mrf.mxu1 }
 0x15c   :  { %v1229_v26 = vpop.f32.mrf.mxu0  ;;  %v1360_v43 = vadd.f32 %v1328_v23, %v1296_v42  ;;  %v1300_v57 = vmul.f32 %v2582_v61, %v2582_v61  ;;  %v1303_v42 = vmul.f32 %v2588_v10, %v2588_v10  ;;  %v1304_v10 = vmul.f32 %v2590_v39, %v2590_v39 }
 0x15d   :  { %v1330_v32 = vmul.f32 %v1228_v35, %v1228_v35  ;;  %v1230_v40 = vadd.f32 %v1229_v26, %v1116_v34  ;;  %1564 = vmatprep.mubr.bf16.mxu0 %v1389_v25  ;;  %v1361_v3 = vadd.f32 %v1329_v28, %v1297_v44  ;;  %v2660_v5 = vpop.f32.mrf.mxu1 }
 0x15e   :  { %v1233_v37 = vpop.f32.mrf.mxu0  ;;  %1565 = vmatmul.mubr.bf16.vlgmr.msra.gmra.mxu0 %v1388_v14 }
 0x15f   :  { %v1362_v45 = vadd.f32 %v1330_v32, %v1298_v60  ;;  %v1331_v48 = vmul.f32 %v1230_v40, %v1230_v40  ;;  %v1234_v55 = vadd.f32 %v1233_v37, %v1120_v59  ;;  %v2662_v20 = vpop.f32.mrf.mxu1  ;;  %v1302_v59 = vmul.f32 %v2586_v4, %v2586_v4 }
 0x160   :  { %v1235_v53 = vpop.f32.mrf.mxu0 }
 0x161   :  { %v1363_v11 = vadd.f32 %v1331_v48, %v1299_v9  ;;  %v1236_v34 = vadd.f32 %v1235_v53, %v1122_v13  ;;  %v1390_v31 = vpack.c.bf16 %v1362_v45, %v1360_v43  ;;  %v1332_v16 = vmul.f32 %v1234_v55, %v1234_v55  ;;  %v2669_v25 = vpop.f32.mrf.mxu1 }
 0x162   :  { %v1237_v38 = vpop.f32.mrf.mxu0 }
 0x163   :  { %v1238_v50 = vadd.f32 %v1237_v38, %v1124_v17  ;;  %v1391_v54 = vpack.c.bf16 %v1363_v11, %v1361_v3  ;;  %v1333_v23 = vmul.f32 %v1236_v34, %v1236_v34  ;;  %v1301_v17 = vmul.f32 %v2584_v0, %v2584_v0  ;;  %v1154_v40 = vpop.f32.mrf.mxu1 }
 0x164   :  { %v1239_v14 = vpop.f32.mrf.mxu0  ;;  %v1364_v61 = vadd.f32 %v1332_v16, %v1300_v57 }
 0x165   :  { %v1334_v35 = vmul.f32 %v1238_v50, %v1238_v50  ;;  %v1240_v13 = vadd.f32 %v1239_v14, %v2630_v22  ;;  %1572 = vmatprep.mubr.bf16.mxu0 %v1391_v54  ;;  %v1365_v44 = vadd.f32 %v1333_v23, %v1301_v17  ;;  %v1156_v53 = vpop.f32.mrf.mxu1 }
 0x166   :  { %v1243_v26 = vpop.f32.mrf.mxu0  ;;  %1573 = vmatmul.mubr.bf16.gmra.mxu0 %v1390_v31 }
 0x167   :  { %v1366_v60 = vadd.f32 %v1334_v35, %v1302_v59  ;;  %v1335_v28 = vmul.f32 %v1240_v13, %v1240_v13  ;;  %v1244_v4 = vadd.f32 %v1243_v26, %v2632_v29  ;;  %v1306_v29 = vmul.f32 %v2594_v2, %v2594_v2  ;;  %v1160_v2 = vpop.f32.mrf.mxu1 }
 0x168   :  { %v1245_v32 = vpop.f32.mrf.mxu0  ;;  %v1310_v26 = vmul.f32 %v2602_v21, %v2602_v21 }
 0x169   :  { %v1392_v22 = vpack.c.bf16 %v1366_v60, %v1364_v61  ;;  %v1367_v9 = vadd.f32 %v1335_v28, %v1303_v42  ;;  %v1246_v37 = vadd.f32 %v1245_v32, %v2638_v51  ;;  %v1336_v45 = vmul.f32 %v1244_v4, %v1244_v4  ;;  %v1162_v42 = vpop.f32.mrf.mxu1 }
 0x16a   :  { %v1247_v43 = vpop.f32.mrf.mxu0  ;;  %v1305_v51 = vmul.f32 %v2592_v49, %v2592_v49 }
 0x16b   :  { %v1248_v0 = vadd.f32 %v1247_v43, %v2644_v46  ;;  %v1393_v48 = vpack.c.bf16 %v1367_v9, %v1365_v44  ;;  %v1337_v3 = vmul.f32 %v1246_v37, %v1246_v37  ;;  %v1307_v46 = vmul.f32 %v2596_v8, %v2596_v8  ;;  %v1164_v21 = vpop.f32.mrf.mxu1 }
 0x16c   :  { %v1249_v55 = vpop.f32.mrf.mxu0  ;;  %v1368_v38 = vadd.f32 %v1336_v45, %v1304_v10  ;;  %v1308_v8 = vmul.f32 %v2598_v15, %v2598_v15 }
 0x16d   :  { %v1338_v11 = vmul.f32 %v1248_v0, %v1248_v0  ;;  %v1250_v34 = vadd.f32 %v1249_v55, %v2646_v19  ;;  %1580 = vmatprep.mubr.bf16.mxu1 %v1393_v48  ;;  %v1369_v57 = vadd.f32 %v1337_v3, %v1305_v51  ;;  %v1166_v55 = vpop.f32.mrf.mxu1 }
 0x16e   :  { %v1253_v31 = vpop.f32.mrf.mxu0  ;;  %1581 = vmatmul.mubr.bf16.vlgmr.msra.gmra.mxu1 %v1392_v22 }
 0x16f   :  { %v1370_v39 = vadd.f32 %v1338_v11, %v1306_v29  ;;  %v1339_v16 = vmul.f32 %v1250_v34, %v1250_v34  ;;  %v1254_v50 = vadd.f32 %v1253_v31, %v2648_v33  ;;  %v1314_v29 = vmul.f32 %v2610_v36, %v2610_v36 }
 0x170   :  { %v1255_v54 = vpop.f32.mrf.mxu0  ;;  %v1315_v34 = vmul.f32 %v2612_v41, %v2612_v41 }
 0x171   :  { %v1371_v14 = vadd.f32 %v1339_v16, %v1307_v46  ;;  %v1256_v19 = vadd.f32 %v1255_v54, %v2654_v1  ;;  %v1394_v59 = vpack.c.bf16 %v1370_v39, %v1368_v38  ;;  %v1340_v35 = vmul.f32 %v1254_v50, %v1254_v50  ;;  %v1170_v39 = vpop.f32.mrf.mxu1 }
 0x172   :  { %v1257_v23 = vpop.f32.mrf.mxu0  ;;  %v1309_v1 = vmul.f32 %v2600_v18, %v2600_v18 }
 0x173   :  { %v1258_v49 = vadd.f32 %v1257_v23, %v1144_v62  ;;  %v1395_v13 = vpack.c.bf16 %v1371_v14, %v1369_v57  ;;  %v1341_v33 = vmul.f32 %v1256_v19, %v1256_v19  ;;  %v1311_v62 = vmul.f32 %v2604_v24, %v2604_v24  ;;  %v1172_v41 = vpop.f32.mrf.mxu1 }
 0x174   :  { %v1259_v17 = vpop.f32.mrf.mxu0  ;;  %v1372_v4 = vadd.f32 %v1340_v35, %v1308_v8  ;;  %v1312_v24 = vmul.f32 %v2606_v27, %v2606_v27  ;;  %v1318_v23 = vmul.f32 %v2618_v58, %v2618_v58  ;;  %v1319_v8 = vmul.f32 %v2620_v63, %v2620_v63 }
 0x175   :  { %v1342_v61 = vmul.f32 %v1258_v49, %v1258_v49  ;;  %v1260_v60 = vadd.f32 %v1259_v17, %v2660_v5  ;;  %1588 = vmatprep.mubr.bf16.mxu1 %v1395_v13  ;;  %v1373_v9 = vadd.f32 %v1341_v33, %v1309_v1  ;;  %v1317_v13 = vmul.f32 %v2616_v52, %v2616_v52 }
 0x176   :  { %v1263_v28 = vpop.f32.mrf.mxu0  ;;  %1589 = vmatmul.mubr.bf16.gmra.mxu1 %v1394_v59  ;;  %v1320_v52 = vmul.f32 %v2622_v7, %v2622_v7 }
 0x177   :  { %v1374_v15 = vadd.f32 %v1342_v61, %v1310_v26  ;;  %v1343_v32 = vmul.f32 %v1260_v60, %v1260_v60  ;;  %v1264_v44 = vadd.f32 %v1263_v28, %v2662_v20  ;;  %v1174_v61 = vpop.f32.mrf.mxu1 }
 0x178   :  { %v1265_v22 = vpop.f32.mrf.mxu0 }
 0x179   :  { %v1375_v37 = vadd.f32 %v1343_v32, %v1311_v62  ;;  %v1266_v5 = vadd.f32 %v1265_v22, %v2669_v25  ;;  %v1396_v43 = vpack.c.bf16 %v1374_v15, %v1372_v4  ;;  %v1344_v0 = vmul.f32 %v1264_v44, %v1264_v44  ;;  %v1176_v63 = vpop.f32.mrf.mxu1 }
 0x17a   :  { %v1267_v45 = vpop.f32.mrf.mxu0  ;;  %v1313_v25 = vmul.f32 %v2608_v30, %v2608_v30  ;;  %v1316_v30 = vmul.f32 %v2614_v47, %v2614_v47 }
 0x17b   :  { %v1268_v18 = vadd.f32 %v1267_v45, %v1154_v40  ;;  %v1397_v48 = vpack.c.bf16 %v1375_v37, %v1373_v9  ;;  %v1345_v20 = vmul.f32 %v1266_v5, %v1266_v5  ;;  %v1376_v51 = vadd.f32 %v1344_v0, %v1312_v24 }
 0x17c   :  { %v1269_v10 = vpop.f32.mrf.mxu0  ;;  %v1323_v45 = vmul.f32 %v2628_v6, %v2628_v6 }
 0x17d   :  { %v1346_v3 = vmul.f32 %v1268_v18, %v1268_v18  ;;  %v1270_v11 = vadd.f32 %v1269_v10, %v1156_v53  ;;  %1596 = vmatprep.mubr.bf16.mxu1 %v1397_v48  ;;  %v1377_v16 = vadd.f32 %v1345_v20, %v1313_v25 }
 0x17e   :  { %v1273_v40 = vpop.f32.mrf.mxu0  ;;  %1597 = vmatmul.mubr.bf16.gmra.mxu1 %v1396_v43  ;;  %v1321_v43 = vmul.f32 %v2624_v12, %v2624_v12 }
 0x17f   :  { %v1378_v46 = vadd.f32 %v1346_v3, %v1314_v29  ;;  %v1347_v27 = vmul.f32 %v1270_v11, %v1270_v11  ;;  %v1274_v31 = vadd.f32 %v1273_v40, %v1160_v2 }
 0x180   :  { %v1275_v38 = vpop.f32.mrf.mxu0 }
 0x181   :  { %v1379_v36 = vadd.f32 %v1347_v27, %v1315_v34  ;;  %v1276_v50 = vadd.f32 %v1275_v38, %v1162_v42  ;;  %v1398_v54 = vpack.c.bf16 %v1378_v46, %v1376_v51  ;;  %v1348_v57 = vmul.f32 %v1274_v31, %v1274_v31 }
 0x182   :  { %v1277_v53 = vpop.f32.mrf.mxu0 }
 0x183   :  { %v1278_v14 = vadd.f32 %v1277_v53, %v1164_v21  ;;  %v1399_v19 = vpack.c.bf16 %v1379_v36, %v1377_v16  ;;  %v1349_v35 = vmul.f32 %v1276_v50, %v1276_v50  ;;  %v1380_v42 = vadd.f32 %v1348_v57, %v1316_v30 }
 0x184   :  { %v1279_v59 = vpop.f32.mrf.mxu0  ;;  %v1322_v21 = vmul.f32 %v2626_v56, %v2626_v56 }
 0x185   :  { %v1350_v2 = vmul.f32 %v1278_v14, %v1278_v14  ;;  %v1280_v49 = vadd.f32 %v1279_v59, %v1166_v55  ;;  %1604 = vmatprep.mubr.bf16.mxu1 %v1399_v19  ;;  %v1381_v1 = vadd.f32 %v1349_v35, %v1317_v13 }
 0x186   :  { %v1283_v17 = vpop.f32.mrf.mxu0  ;;  %1605 = vmatmul.mubr.bf16.gmra.mxu1 %v1398_v54 }
 0x187   :  { %v1382_v26 = vadd.f32 %v1350_v2, %v1318_v23  ;;  %v1351_v47 = vmul.f32 %v1280_v49, %v1280_v49  ;;  %v1284_v33 = vadd.f32 %v1283_v17, %v1170_v39 }
 0x188   :  { %v1285_v60 = vpop.f32.mrf.mxu0 }
 0x189   :  { %v1383_v58 = vadd.f32 %v1351_v47, %v1319_v8  ;;  %v1286_v62 = vadd.f32 %v1285_v60, %v1172_v41  ;;  %v1400_v28 = vpack.c.bf16 %v1382_v26, %v1380_v42  ;;  %v1352_v15 = vmul.f32 %v1284_v33, %v1284_v33 }
 0x18a   :  { %v1287_v4 = vpop.f32.mrf.mxu0 }
 0x18b   :  { %v1288_v32 = vadd.f32 %v1287_v4, %v1174_v61  ;;  %v1401_v44 = vpack.c.bf16 %v1383_v58, %v1381_v1  ;;  %v1353_v9 = vmul.f32 %v1286_v62, %v1286_v62  ;;  %v1384_v0 = vadd.f32 %v1352_v15, %v1320_v52 }
 0x18c   :  { %v1289_v22 = vpop.f32.mrf.mxu0 }
 0x18d   :  { %v1354_v37 = vmul.f32 %v1288_v32, %v1288_v32  ;;  %v1290_v5 = vadd.f32 %v1289_v22, %v1176_v63  ;;  %1612 = vmatprep.mubr.bf16.mxu1 %v1401_v44  ;;  %v1385_v7 = vadd.f32 %v1353_v9, %v1321_v43 }
 0x18e   :  { %1613 = vmatmul.mubr.bf16.gmra.mxu1 %v1400_v28 }
 0x18f   :  { %v1386_v18 = vadd.f32 %v1354_v37, %v1322_v21  ;;  %v1355_v48 = vmul.f32 %v1290_v5, %v1290_v5 }
 0x191   :  { %v1387_v24 = vadd.f32 %v1355_v48, %v1323_v45  ;;  %v1402_v10 = vpack.c.bf16 %v1386_v18, %v1384_v0 }
 0x193   :  { %v1403_v55 = vpack.c.bf16 %v1387_v24, %v1385_v7 }
 0x195   :  { %1620 = vmatprep.mubr.bf16.mxu1 %v1403_v55 }
 0x196   :  { %1621 = vmatmul.mubr.bf16.gmra.mxu1 %v1402_v10 }
 0x21e   :  { %v1940_v56 = vpop.f32.mrf.mxu0 }
 0x220   :  { %v1941_v29 = vpop.f32.mrf.mxu0 }
 0x221   :  { %v1942_v20 = vadd.f32 %v1941_v29, %v1940_v56 }
 0x222   :  { %v1943_v3 = vpop.f32.mrf.mxu0 }
 0x223   :  { %v1629_v11 = vmax.f32 %v1942_v20, 1e-10 }
 0x224   :  { %v1944_v25 = vpop.f32.mrf.mxu0 }
 0x225   :  { %2221 = vlog2.f32 %v1629_v11  ;;  %v1945_v12 = vadd.f32 %v1944_v25, %v1943_v3 }
 0x226   :  { %v1946_v34 = vpop.f32.mrf.mxu0 }
 0x227   :  { %v1630_v40 = vmax.f32 %v1945_v12, 1e-10 }
 0x228   :  { %v1947_v6 = vpop.f32.mrf.mxu0 }
 0x229   :  { %2223 = vlog2.f32 %v1630_v40  ;;  %v1948_v51 = vadd.f32 %v1947_v6, %v1946_v34 }
 0x22a   :  { %v1949_v46 = vpop.f32.mrf.mxu0 }
 0x22b   :  { %v1631_v27 = vmax.f32 %v1948_v51, 1e-10 }
 0x22c   :  { %v1950_v31 = vpop.f32.mrf.mxu0 }
 0x22d   :  { %2225 = vlog2.f32 %v1631_v27  ;;  %v1951_v38 = vadd.f32 %v1950_v31, %v1949_v46 }
 0x22e   :  { %v1952_v39 = vpop.f32.mrf.mxu1 }
 0x22f   :  { %v1632_v16 = vmax.f32 %v1951_v38, 1e-10 }
 0x230   :  { %v1953_v36 = vpop.f32.mrf.mxu1 }
 0x231   :  { %2227 = vlog2.f32 %v1632_v16  ;;  %v1954_v50 = vadd.f32 %v1953_v36, %v1952_v39 }
 0x232   :  { %v2222_v54 = vpop.eup %2221  ;;  %v1955_v53 = vpop.f32.mrf.mxu1 }
 0x233   :  { %v1646_v57 = vmul.f32 0.6931472, %v2222_v54  ;;  %v1633_v14 = vmax.f32 %v1954_v50, 1e-10 }
 0x234   :  { %v1956_v19 = vpop.f32.mrf.mxu1 }
 0x235   :  { %v1677_v30 = vmul.f32 0.4342945, %v1646_v57  ;;  %2229 = vlog2.f32 %v1633_v14  ;;  %v1957_v41 = vadd.f32 %v1956_v19, %v1955_v53 }
 0x236   :  { %v2224_v59 = vpop.eup %2223  ;;  %v1958_v23 = vpop.f32.mrf.mxu1 }
 0x237   :  { %v2724_v35 = vmul.f32 10.0, %v1677_v30  ;;  %v1648_v2 = vmul.f32 0.6931472, %v2224_v59  ;;  %v1634_v49 = vmax.f32 %v1957_v41, 1e-10 }
 0x238   :  { %v1959_v13 = vpop.f32.mrf.mxu1 }
 0x239   :  { %1709 = vst [vmem:[%s2810_s3] sm:$0xff] %v2724_v35  ;;  %v1678_v8 = vmul.f32 0.4342945, %v1648_v2  ;;  %2231 = vlog2.f32 %v1634_v49  ;;  %v1960_v17 = vadd.f32 %v1959_v13, %v1958_v23 }
 0x23a   :  { %v2226_v42 = vpop.eup %2225  ;;  %v1961_v26 = vpop.f32.mrf.mxu1 }
 0x23b   :  { %v2730_v47 = vmul.f32 10.0, %v1678_v8  ;;  %v1650_v33 = vmul.f32 0.6931472, %v2226_v42  ;;  %v1635_v61 = vmax.f32 %v1960_v17, 1e-10 }
 0x23c   :  { %v1962_v60 = vpop.f32.mrf.mxu1 }
 0x23d   :  { %1710 = vst [vmem:[%s2810_s3 + $0x8] sm:$0xff] %v2730_v47  ;;  %v1679_v1 = vmul.f32 0.4342945, %v1650_v33  ;;  %2233 = vlog2.f32 %v1635_v61  ;;  %v1963_v58 = vadd.f32 %v1962_v60, %v1961_v26 }
 0x23e   :  { %v2228_v62 = vpop.eup %2227  ;;  %v1964_v28 = vpop.f32.mrf.mxu1 }
 0x23f   :  { %v2736_v4 = vmul.f32 10.0, %v1679_v1  ;;  %v1652_v15 = vmul.f32 0.6931472, %v2228_v62  ;;  %v1636_v32 = vmax.f32 %v1963_v58, 1e-10 }
 0x240   :  { %v1965_v44 = vpop.f32.mrf.mxu1 }
 0x241   :  { %1711 = vst [vmem:[%s2810_s3 + $0x10] sm:$0xff] %v2736_v4  ;;  %v1680_v52 = vmul.f32 0.4342945, %v1652_v15  ;;  %2235 = vlog2.f32 %v1636_v32  ;;  %v1966_v63 = vadd.f32 %v1965_v44, %v1964_v28 }
 0x242   :  { %v2230_v22 = vpop.eup %2229  ;;  %v1967_v21 = vpop.f32.mrf.mxu1 }
 0x243   :  { %v2742_v9 = vmul.f32 10.0, %v1680_v52  ;;  %v1654_v37 = vmul.f32 0.6931472, %v2230_v22  ;;  %v1637_v5 = vmax.f32 %v1966_v63, 1e-10 }
 0x244   :  { %v1968_v43 = vpop.f32.mrf.mxu1 }
 0x245   :  { %1712 = vst [vmem:[%s2810_s3 + $0x18] sm:$0xff] %v2742_v9  ;;  %v1681_v45 = vmul.f32 0.4342945, %v1654_v37  ;;  %2237 = vlog2.f32 %v1637_v5  ;;  %v1969_v0 = vadd.f32 %v1968_v43, %v1967_v21 }
 0x246   :  { %v2232_v18 = vpop.eup %2231  ;;  %v1970_v48 = vpop.f32.mrf.mxu1 }
 0x247   :  { %v2748_v7 = vmul.f32 10.0, %v1681_v45  ;;  %v1656_v24 = vmul.f32 0.6931472, %v2232_v18  ;;  %v1638_v10 = vmax.f32 %v1969_v0, 1e-10 }
 0x248   :  { %v1971_v55 = vpop.f32.mrf.mxu1 }
 0x249   :  { %1713 = vst [vmem:[%s2810_s3 + $0x20] sm:$0xff] %v2748_v7  ;;  %v1682_v56 = vmul.f32 0.4342945, %v1656_v24  ;;  %2239 = vlog2.f32 %v1638_v10  ;;  %v1972_v29 = vadd.f32 %v1971_v55, %v1970_v48 }
 0x24a   :  { %v2234_v20 = vpop.eup %2233  ;;  %v1973_v3 = vpop.f32.mrf.mxu1 }
 0x24b   :  { %v2754_v11 = vmul.f32 10.0, %v1682_v56  ;;  %v1658_v25 = vmul.f32 0.6931472, %v2234_v20  ;;  %v1639_v12 = vmax.f32 %v1972_v29, 1e-10 }
 0x24c   :  { %v1974_v34 = vpop.f32.mrf.mxu1 }
 0x24d   :  { %1714 = vst [vmem:[%s2810_s3 + $0x28] sm:$0xff] %v2754_v11  ;;  %v1683_v40 = vmul.f32 0.4342945, %v1658_v25  ;;  %2241 = vlog2.f32 %v1639_v12  ;;  %v1975_v6 = vadd.f32 %v1974_v34, %v1973_v3  ;;  %v1728_v29 = vmax.f32 %v2730_v47, %v2754_v11 }
 0x24e   :  { %v2236_v51 = vpop.eup %2235  ;;  %v1976_v46 = vpop.f32.mrf.mxu1  ;;  %v1727_v25 = vmax.f32 %v2724_v35, %v2748_v7 }
 0x24f   :  { %v2760_v27 = vmul.f32 10.0, %v1683_v40  ;;  %v1660_v31 = vmul.f32 0.6931472, %v2236_v51  ;;  %v1640_v38 = vmax.f32 %v1975_v6, 1e-10 }
 0x250   :  { %v1977_v39 = vpop.f32.mrf.mxu1 }
 0x251   :  { %1715 = vst [vmem:[%s2810_s3 + $0x30] sm:$0xff] %v2760_v27  ;;  %v1684_v16 = vmul.f32 0.4342945, %v1660_v31  ;;  %2243 = vlog2.f32 %v1640_v38  ;;  %v1978_v36 = vadd.f32 %v1977_v39, %v1976_v46  ;;  %v1729_v12 = vmax.f32 %v2736_v4, %v2760_v27 }
 0x252   :  { %v2238_v50 = vpop.eup %2237  ;;  %v1979_v54 = vpop.f32.mrf.mxu1 }
 0x253   :  { %v2766_v53 = vmul.f32 10.0, %v1684_v16  ;;  %v1662_v57 = vmul.f32 0.6931472, %v2238_v50  ;;  %v1641_v14 = vmax.f32 %v1978_v36, 1e-10  ;;  %v1725_v16 = vlaneseq }
 0x254   :  { %v1980_v19 = vpop.f32.mrf.mxu1 }
 0x255   :  { %1716 = vst [vmem:[%s2810_s3 + $0x38] sm:$0xff] %v2766_v53  ;;  %v1685_v30 = vmul.f32 0.4342945, %v1662_v57  ;;  %2245 = vlog2.f32 %v1641_v14  ;;  %v1981_v41 = vadd.f32 %v1980_v19, %v1979_v54  ;;  %v1730_v34 = vmax.f32 %v2742_v9, %v2766_v53 }
 0x256   :  { %v2240_v59 = vpop.eup %2239  ;;  %v1982_v23 = vpop.f32.mrf.mxu1  ;;  %v1726_v54 = vand.u32 127, %v1725_v16 }
 0x257   :  { %v1701_v2 = vmul.f32 10.0, %v1685_v30  ;;  %v1664_v49 = vmul.f32 0.6931472, %v2240_v59  ;;  %v1642_v13 = vmax.f32 %v1981_v41, 1e-10 }
 0x258   :  { %v1983_v8 = vpop.f32.mrf.mxu1  ;;  %vm1748_vm1 = vcmp.lt.s32.totalorder %v1726_v54, 40 }
 0x259   :  { %1717 = vst [vmem:[%s2810_s3 + $0x40] sm:$0xff] %v1701_v2  ;;  %v1686_v17 = vmul.f32 0.4342945, %v1664_v49  ;;  %2247 = vlog2.f32 %v1642_v13  ;;  %v1984_v42 = vadd.f32 %v1983_v8, %v1982_v23  ;;  %v1731_v51 = vmax.f32 %v1727_v25, %v1701_v2 }
 0x25a   :  { %v2242_v26 = vpop.eup %2241  ;;  %v1985_v33 = vpop.f32.mrf.mxu1 }
 0x25b   :  { %v1702_v61 = vmul.f32 10.0, %v1686_v17  ;;  %v1666_v60 = vmul.f32 0.6931472, %v2242_v26  ;;  %v1643_v1 = vmax.f32 %v1984_v42, 1e-10 }
 0x25c   :  { %v1986_v58 = vpop.f32.mrf.mxu1 }
 0x25d   :  { %1718 = vst [vmem:[%s2810_s3 + $0x48] sm:$0xff] %v1702_v61  ;;  %v1687_v62 = vmul.f32 0.4342945, %v1666_v60  ;;  %2249 = vlog2.f32 %v1643_v1  ;;  %v1987_v28 = vadd.f32 %v1986_v58, %v1985_v33  ;;  %v1732_v40 = vmax.f32 %v1728_v29, %v1702_v61 }
 0x25e   :  { %v2244_v15 = vpop.eup %2243 }
 0x25f   :  { %v1703_v32 = vmul.f32 10.0, %v1687_v62  ;;  %v1668_v44 = vmul.f32 0.6931472, %v2244_v15  ;;  %v1644_v52 = vmax.f32 %v1987_v28, 1e-10 }
 0x261   :  { %1719 = vst [vmem:[%s2810_s3 + $0x50] sm:$0xff] %v1703_v32  ;;  %v1688_v63 = vmul.f32 0.4342945, %v1668_v44  ;;  %2251 = vlog2.f32 %v1644_v52  ;;  %v1733_v46 = vmax.f32 %v1729_v12, %v1703_v32 }
 0x262   :  { %v2246_v22 = vpop.eup %2245 }
 0x263   :  { %v1704_v21 = vmul.f32 10.0, %v1688_v63  ;;  %v1670_v37 = vmul.f32 0.6931472, %v2246_v22 }
 0x265   :  { %1720 = vst [vmem:[%s2810_s3 + $0x58] sm:$0xff] %v1704_v21  ;;  %v1689_v5 = vmul.f32 0.4342945, %v1670_v37  ;;  %v1734_v47 = vmax.f32 %v1730_v34, %v1704_v21 }
 0x266   :  { %v2248_v43 = vpop.eup %2247 }
 0x267   :  { %v1705_v45 = vmul.f32 10.0, %v1689_v5  ;;  %v1672_v0 = vmul.f32 0.6931472, %v2248_v43 }
 0x269   :  { %1721 = vst [vmem:[%s2810_s3 + $0x60] sm:$0xff] %v1705_v45  ;;  %v1690_v18 = vmul.f32 0.4342945, %v1672_v0  ;;  %v1735_v38 = vmax.f32 %v1731_v51, %v1705_v45 }
 0x26a   :  { %v2250_v48 = vpop.eup %2249 }
 0x26b   :  { %v1706_v24 = vmul.f32 10.0, %v1690_v18  ;;  %v1674_v10 = vmul.f32 0.6931472, %v2250_v48 }
 0x26d   :  { %1722 = vst [vmem:[%s2810_s3 + $0x68] sm:$0xff] %v1706_v24  ;;  %v1691_v55 = vmul.f32 0.4342945, %v1674_v10  ;;  %v1736_v11 = vmax.f32 %v1732_v40, %v1706_v24 }
 0x26e   :  { %v2252_v56 = vpop.eup %2251 }
 0x26f   :  { %v1707_v20 = vmul.f32 10.0, %v1691_v55  ;;  %v1676_v3 = vmul.f32 0.6931472, %v2252_v56  ;;  %v1739_v4 = vmax.f32 %v1735_v38, %v1736_v11 }
 0x271   :  { %1723 = vst [vmem:[%s2810_s3 + $0x70] sm:$0xff] %v1707_v20  ;;  %v1692_v6 = vmul.f32 0.4342945, %v1676_v3  ;;  %v1737_v39 = vmax.f32 %v1733_v46, %v1707_v20 }
 0x273   :  { %v1708_v31 = vmul.f32 10.0, %v1692_v6 }
 0x275   :  { %1724 = vst [vmem:[%s2810_s3 + $0x78] sm:$0xff] %v1708_v31  ;;  %v1738_v35 = vmax.f32 %v1734_v47, %v1708_v31 }
 0x277   :  { %v1740_v9 = vmax.f32 %v1737_v39, %v1738_v35 }
 0x279   :  { %v1741_v7 = vmax.f32 %v1739_v4, %v1740_v9 }
 0x27b   :  { %v1742_v27 = vrot.slane %v1741_v7, 4 }
 0x27d   :  { %v1743_v36 = vmax.f32 %v1741_v7, %v1742_v27 }
 0x27f   :  { %v1744_v50 = vrot.slane %v1743_v36, 2 }
 0x281   :  { %v1745_v53 = vmax.f32 %v1743_v36, %v1744_v50 }
 0x283   :  { %v1746_v57 = vrot.slane %v1745_v53, 1 }
 0x285   :  { %v1747_v14 = vmax.f32 %v1745_v53, %v1746_v57 }
 0x287   :  { %v1749_v19 = vsel %vm1748_vm1, %v1747_v14, -1e+30 }
 0x288   :  { %1750 = vst [vmem:[%s2811_s4] sm:$0xff] %v1749_v19 }
 0x289   :  { %1759 = vsyncpa [#allocation3], 1 }

</bundles_post_ra>
